<compile_context>
chip_gen: v7x
topology: tpu7x:2x2x1
jax: 0.10.0
libtpu: 0.0.40
codegen_flags: <defaults>
</compile_context>

<pallas_src>
import functools

import jax
import jax.numpy as jnp
from jax.experimental import pallas as pl
from jax.experimental.pallas import tpu as pltpu

TB_MAX = 1024      # max batch tile (rows)
K_IN = 26          # real input features
K_PAD = 128        # padded input features (col 26 carries the constant-1 bias term)
H1, H2 = 1024, 256
N_OUT = 10         # real output width
N_PAD = 128        # padded output width (lane-dense stores)


def _round_up(n, m):
    return ((n + m - 1) // m) * m


def _elementwise_dtype():
    """bf16 tanh/activations on v6e/v7x, f32 on older chips (no bf16 VPU/EUP)."""
    try:
        kind = jax.devices()[0].device_kind.lower()
    except Exception:
        kind = ""
    if ("v6" in kind) or ("v7" in kind) or ("7x" in kind):
        return jnp.bfloat16
    return jnp.float32


def _fcn_kernel(x_ref, w1_ref, w2_ref, c2_ref, w3_ref, b3_ref, o_ref, *, act_dtype):
    """Fused forward pass for one batch tile.

    Layer 1: tanh(x_pad @ W1_pad)            (BN scale + shift folded into W1
                                              via a constant-1 input column)
    Layer 2: tanh(h1 @ (W2*s2) + c2)
    Layer 3: h2 @ W3_pad + b3_pad            (output padded 10 -> 128)
    Dropout(0.5) is identity in eval mode.
    """
    x = x_ref[...]                                            # bf16 [TB, 128]

    # Linear(26 -> 1024) + folded BatchNorm + bias, f32 accumulation on MXU.
    h1 = jnp.dot(x, w1_ref[...], preferred_element_type=jnp.float32)
    h1 = jnp.tanh(h1.astype(act_dtype))                       # bf16 EUP on v6e/v7x
    # TODO(synk): training-mode Dropout(0.5) / batch-stat BatchNorm not modeled
    # (eval-mode semantics only).

    # Linear(1024 -> 256) + folded BatchNorm (scale in W2, shift added here).
    h2 = jnp.dot(h1.astype(jnp.bfloat16), w2_ref[...],
                 preferred_element_type=jnp.float32)
    h2 = jnp.tanh((h2 + c2_ref[...]).astype(act_dtype))

    # Linear(256 -> 10), output padded to 128 lanes -> unmasked lane-dense stores.
    o_ref[...] = (jnp.dot(h2.astype(jnp.bfloat16), w3_ref[...],
                          preferred_element_type=jnp.float32)
                  + b3_ref[...])


def prepare_params(params, eps=1e-5):
    """Fold BatchNorm (eval, running stats) into the linear weights, pad for
    lane-dense layouts and cast matmul operands to bf16.  Call ONCE per set of
    parameters (hoisted out of the per-call forward path)."""
    (w1, b1, g1, be1, m1, v1,
     w2, b2, g2, be2, m2, v2,
     w3, b3) = params

    # y = (x@W + b) * s + t  with  s = gamma/sqrt(var+eps), t = beta - mean*s
    s1 = g1 / jnp.sqrt(v1 + eps)
    c1 = b1 * s1 + (be1 - m1 * s1)
    s2 = g2 / jnp.sqrt(v2 + eps)
    c2 = b2 * s2 + (be2 - m2 * s2)

    # Layer 1: fold the additive shift c1 as an extra weight row (matched by a
    # constant-1 input column), then zero-pad K: 27 -> 128.
    w1s = w1 * s1[None, :]                                     # [26, 1024] f32
    w1p = jnp.concatenate([w1s, c1[None, :]], axis=0)          # [27, 1024]
    w1p = jnp.pad(w1p, ((0, K_PAD - (K_IN + 1)), (0, 0))).astype(jnp.bfloat16)

    # Layer 2: scale folded into W2, additive shift kept (K=1024 already aligned).
    w2f = (w2 * s2[None, :]).astype(jnp.bfloat16)              # [1024, 256]
    c2_ = c2[None, :]                                          # f32 [1, 256]

    # Layer 3: pad output 10 -> 128 for unmasked lane-dense stores.
    w3p = jnp.pad(w3, ((0, 0), (0, N_PAD - N_OUT))).astype(jnp.bfloat16)
    b3p = jnp.pad(b3, (0, N_PAD - N_OUT))[None, :].astype(jnp.float32)  # [1, 128]

    return (w1p, w2f, c2_, w3p, b3p)


@jax.jit
def fcn_forward(x, folded):
    """x: [B, 26] float32, folded = prepare_params(params) -> [B, 10] float32."""
    w1p, w2f, c2_, w3p, b3p = folded
    B = x.shape[0]

    # Adaptive batch tile: big tiles for throughput, minimal padding for tiny B.
    TB = min(TB_MAX, _round_up(max(B, 1), 128))
    n_tiles = (B + TB - 1) // TB          # >= 2 automatically once B > TB_MAX
    Bp = n_tiles * TB

    # Lane-dense input: [B, 26] -> [Bp, 128] bf16, with column 26 == 1.0
    # (constant bias column matching the folded c1 row of W1).
    x_bf = x.astype(jnp.bfloat16)
    ones = jnp.ones((B, 1), jnp.bfloat16)
    xp = jnp.concatenate([x_bf, ones], axis=1)                 # [B, 27]
    xp = jnp.pad(xp, ((0, Bp - B), (0, K_PAD - (K_IN + 1))))   # [Bp, 128]

    act_dtype = _elementwise_dtype()

    # Weights / shifts pinned to block (0, 0): loaded once, VMEM-resident
    # across all batch tiles.
    def pinned(arr):
        return pl.BlockSpec(arr.shape, lambda i: (0, 0))

    in_specs = [
        pl.BlockSpec((TB, K_PAD), lambda i: (i, 0)),           # x tile
        pinned(w1p), pinned(w2f), pinned(c2_), pinned(w3p), pinned(b3p),
    ]
    out_spec = pl.BlockSpec((TB, N_PAD), lambda i: (i, 0))

    flops = 2 * Bp * (K_PAD * H1 + H1 * H2 + H2 * N_PAD)
    transcendentals = Bp * (H1 + H2)
    bytes_accessed = (xp.size * 2 + w1p.size * 2 + w2f.size * 2 + w3p.size * 2
                      + c2_.size * 4 + b3p.size * 4 + Bp * N_PAD * 4)

    out = pl.pallas_call(
        functools.partial(_fcn_kernel, act_dtype=act_dtype),
        out_shape=jax.ShapeDtypeStruct((Bp, N_PAD), jnp.float32),
        grid=(n_tiles,),
        in_specs=in_specs,
        out_specs=out_spec,
        compiler_params=pltpu.CompilerParams(
            dimension_semantics=("parallel",),   # megacore batch split (v7x)
            vmem_limit_bytes=32 * 1024 * 1024,   # ample at TB=1024, safe on 64 MiB v7x
        ),
        cost_estimate=pl.CostEstimate(
            flops=flops,
            transcendentals=transcendentals,
            bytes_accessed=bytes_accessed,
        ),
    )(xp, w1p, w2f, c2_, w3p, b3p)

    return out[:B, :N_OUT]


def init_params(key):
    """Deterministic parameter init mimicking PyTorch defaults
    (uniform(-1/sqrt(fan_in), 1/sqrt(fan_in)) for Linear;
     gamma=1, beta=0, running_mean=0, running_var=1 for BatchNorm1d)."""
    dims = [(K_IN, H1), (H1, H2), (H2, N_OUT)]
    keys = jax.random.split(key, 2 * len(dims))
    params = []
    for i, (fin, fout) in enumerate(dims):
        bound = 1.0 / jnp.sqrt(jnp.float32(fin))
        w = jax.random.uniform(keys[2 * i], (fin, fout), jnp.float32,
                               -bound, bound)
        b = jax.random.uniform(keys[2 * i + 1], (fout,), jnp.float32,
                               -bound, bound)
        params.append((w, b))
    (w1, b1), (w2, b2), (w3, b3) = params
    g1 = jnp.ones((H1,), jnp.float32)
    be1 = jnp.zeros((H1,), jnp.float32)
    m1 = jnp.zeros((H1,), jnp.float32)
    v1 = jnp.ones((H1,), jnp.float32)
    g2 = jnp.ones((H2,), jnp.float32)
    be2 = jnp.zeros((H2,), jnp.float32)
    m2 = jnp.zeros((H2,), jnp.float32)
    v2 = jnp.ones((H2,), jnp.float32)
    return (w1, b1, g1, be1, m1, v1,
            w2, b2, g2, be2, m2, v2,
            w3, b3)


if __name__ == "__main__":
    key = jax.random.PRNGKey(0)
    pkey, xkey = jax.random.split(key)
    params = init_params(pkey)
    folded = prepare_params(params)   # BN fold / pad / bf16 cast done once

    B = 8
    x = jax.random.normal(xkey, (B, K_IN), jnp.float32)

    out = fcn_forward(x, folded)
    out = jax.block_until_ready(out)
    assert out.shape == (B, N_OUT) and out.dtype == jnp.float32

    # Pure-JAX reference with the SAME numerics as the kernel (same folded /
    # padded bf16 weights, same activation dtype).
    act_dtype = _elementwise_dtype()
    w1p, w2f, c2_, w3p, b3p = folded
    xb = jnp.concatenate([x.astype(jnp.bfloat16),
                          jnp.ones((B, 1), jnp.bfloat16)], axis=1)
    xb = jnp.pad(xb, ((0, 0), (0, K_PAD - (K_IN + 1))))
    h1 = jnp.tanh(jnp.dot(xb, w1p,
                          preferred_element_type=jnp.float32).astype(act_dtype))
    h2 = jnp.dot(h1.astype(jnp.bfloat16), w2f,
                 preferred_element_type=jnp.float32)
    h2 = jnp.tanh((h2 + c2_).astype(act_dtype))
    ref_matched = (jnp.dot(h2.astype(jnp.bfloat16), w3p,
                           preferred_element_type=jnp.float32) + b3p)[:, :N_OUT]
    assert jnp.allclose(out, ref_matched, atol=2e-2, rtol=2e-2)

    # Loose sanity check against the full-f32 eval-mode reference
    # (differences are bf16 rounding of weights/activations only).
    (w1, b1, g1, be1, m1, v1, w2, b2, g2, be2, m2, v2, w3, b3) = params
    eps = 1e-5
    h1f = jnp.tanh((x @ w1 + b1 - m1) / jnp.sqrt(v1 + eps) * g1 + be1)
    h2f = jnp.tanh((h1f @ w2 + b2 - m2) / jnp.sqrt(v2 + eps) * g2 + be2)
    ref_f32 = h2f @ w3 + b3
    assert jnp.allclose(out, ref_f32, atol=5e-2, rtol=5e-2)

    print("KERNEL_OK")
</pallas_src>

<mosaic_0001>
module attributes {stable_mosaic.version = 11 : i64} {
  func.func @_fcn_kernel(%arg0: i32, %arg1: memref<128x128xbf16, #tpu.memory_space<vmem>>, %arg2: memref<128x1024xbf16, #tpu.memory_space<vmem>>, %arg3: memref<1024x256xbf16, #tpu.memory_space<vmem>>, %arg4: memref<1x256xf32, #tpu.memory_space<vmem>>, %arg5: memref<256x128xbf16, #tpu.memory_space<vmem>>, %arg6: memref<1x128xf32, #tpu.memory_space<vmem>>, %arg7: memref<128x128xf32, #tpu.memory_space<vmem>>) attributes {dimension_semantics = [#tpu.dimension_semantics<parallel>], iteration_bounds = array<i64: 1>, scalar_prefetch = 0 : i64, scratch_operands = 0 : i64, tpu.core_type = #tpu.core_type<tc>, window_params = [{transform_indices = @transform_0, window_bounds = array<i64: 128, 128>}, {pipeline_mode = #tpu.pipeline_mode<synchronous>, transform_indices = @transform_1, window_bounds = array<i64: 128, 1024>}, {pipeline_mode = #tpu.pipeline_mode<synchronous>, transform_indices = @transform_2, window_bounds = array<i64: 1024, 256>}, {pipeline_mode = #tpu.pipeline_mode<synchronous>, transform_indices = @transform_3, window_bounds = array<i64: 1, 256>}, {pipeline_mode = #tpu.pipeline_mode<synchronous>, transform_indices = @transform_4, window_bounds = array<i64: 256, 128>}, {pipeline_mode = #tpu.pipeline_mode<synchronous>, transform_indices = @transform_5, window_bounds = array<i64: 1, 128>}, {transform_indices = @transform_6, window_bounds = array<i64: 128, 128>}]} {
    %c0 = arith.constant 0 : index
    %c0_0 = arith.constant 0 : index
    %0 = vector.load %arg1[%c0, %c0_0] : memref<128x128xbf16, #tpu.memory_space<vmem>>, vector<128x128xbf16>
    %c0_1 = arith.constant 0 : index
    %c0_2 = arith.constant 0 : index
    %1 = vector.load %arg2[%c0_1, %c0_2] : memref<128x1024xbf16, #tpu.memory_space<vmem>>, vector<128x1024xbf16>
    %cst = arith.constant dense<0.000000e+00> : vector<128x1024xf32>
    %2 = tpu.matmul %0, %1, %cst {dimension_numbers = #tpu.dot_dimension_numbers<[1], [0], [0], [1], [0, 0, 1, 1], [], []>} : vector<128x128xbf16>, vector<128x1024xbf16>, vector<128x1024xf32> -> vector<128x1024xf32>
    %3 = math.tanh %2 : vector<128x1024xf32>
    %4 = arith.truncf %3 : vector<128x1024xf32> to vector<128x1024xbf16>
    %c0_3 = arith.constant 0 : index
    %c0_4 = arith.constant 0 : index
    %5 = vector.load %arg3[%c0_3, %c0_4] : memref<1024x256xbf16, #tpu.memory_space<vmem>>, vector<1024x256xbf16>
    %cst_5 = arith.constant dense<0.000000e+00> : vector<128x256xf32>
    %6 = tpu.matmul %4, %5, %cst_5 {dimension_numbers = #tpu.dot_dimension_numbers<[1], [0], [0], [1], [0, 0, 1, 1], [], []>} : vector<128x1024xbf16>, vector<1024x256xbf16>, vector<128x256xf32> -> vector<128x256xf32>
    %c0_6 = arith.constant 0 : index
    %c0_7 = arith.constant 0 : index
    %7 = vector.load %arg4[%c0_6, %c0_7] : memref<1x256xf32, #tpu.memory_space<vmem>>, vector<1x256xf32>
    %8 = vector.broadcast %7 : vector<1x256xf32> to vector<128x256xf32>
    %9 = arith.addf %6, %8 : vector<128x256xf32>
    %10 = math.tanh %9 : vector<128x256xf32>
    %11 = arith.truncf %10 : vector<128x256xf32> to vector<128x256xbf16>
    %c0_8 = arith.constant 0 : index
    %c0_9 = arith.constant 0 : index
    %12 = vector.load %arg5[%c0_8, %c0_9] : memref<256x128xbf16, #tpu.memory_space<vmem>>, vector<256x128xbf16>
    %cst_10 = arith.constant dense<0.000000e+00> : vector<128x128xf32>
    %13 = tpu.matmul %11, %12, %cst_10 {dimension_numbers = #tpu.dot_dimension_numbers<[1], [0], [0], [1], [0, 0, 1, 1], [], []>} : vector<128x256xbf16>, vector<256x128xbf16>, vector<128x128xf32> -> vector<128x128xf32>
    %c0_11 = arith.constant 0 : index
    %c0_12 = arith.constant 0 : index
    %14 = vector.load %arg6[%c0_11, %c0_12] : memref<1x128xf32, #tpu.memory_space<vmem>>, vector<1x128xf32>
    %15 = vector.broadcast %14 : vector<1x128xf32> to vector<128x128xf32>
    %16 = arith.addf %13, %15 : vector<128x128xf32>
    %c0_13 = arith.constant 0 : index
    %c0_14 = arith.constant 0 : index
    %17 = vector.load %arg7[%c0_13, %c0_14] : memref<128x128xf32, #tpu.memory_space<vmem>>, vector<128x128xf32>
    tpu.vector_store %arg7[%c0_13, %c0_14], %16 {strides = array<i32>} : memref<128x128xf32, #tpu.memory_space<vmem>>, vector<128x128xf32>,
    return
  }
  func.func @transform_0(%arg0: i32) -> (i32, i32) {
    %c0_i32 = arith.constant 0 : i32
    %c0_i32_0 = arith.constant 0 : i32
    return %arg0, %c0_i32 : i32, i32
  }
  func.func @transform_1(%arg0: i32) -> (i32, i32) {
    %c0_i32 = arith.constant 0 : i32
    %c0_i32_0 = arith.constant 0 : i32
    %c0_i32_1 = arith.constant 0 : i32
    return %c0_i32, %c0_i32_0 : i32, i32
  }
  func.func @transform_2(%arg0: i32) -> (i32, i32) {
    %c0_i32 = arith.constant 0 : i32
    %c0_i32_0 = arith.constant 0 : i32
    %c0_i32_1 = arith.constant 0 : i32
    return %c0_i32, %c0_i32_0 : i32, i32
  }
  func.func @transform_3(%arg0: i32) -> (i32, i32) {
    %c0_i32 = arith.constant 0 : i32
    %c0_i32_0 = arith.constant 0 : i32
    %c0_i32_1 = arith.constant 0 : i32
    return %c0_i32, %c0_i32_0 : i32, i32
  }
  func.func @transform_4(%arg0: i32) -> (i32, i32) {
    %c0_i32 = arith.constant 0 : i32
    %c0_i32_0 = arith.constant 0 : i32
    %c0_i32_1 = arith.constant 0 : i32
    return %c0_i32, %c0_i32_0 : i32, i32
  }
  func.func @transform_5(%arg0: i32) -> (i32, i32) {
    %c0_i32 = arith.constant 0 : i32
    %c0_i32_0 = arith.constant 0 : i32
    %c0_i32_1 = arith.constant 0 : i32
    return %c0_i32, %c0_i32_0 : i32, i32
  }
  func.func @transform_6(%arg0: i32) -> (i32, i32) {
    %c0_i32 = arith.constant 0 : i32
    %c0_i32_0 = arith.constant 0 : i32
    return %arg0, %c0_i32 : i32, i32
  }
}

</mosaic_0001>

<bundles_post_ra>
// kernel: fcn_forward.1
= control target key start
LH: loop header
LB: loop body
LE: loop exit
PB: predicated region body
PF: predicated region fallthrough
CT: control target
= control target key end

     0   :  { %11 = vsyncpa [#allocation3], 0  ;;  %s4375_s0 = inlined_call_operand.vmem [shape: bf16[128,128], index: 0, kind: input, shape index: {}]   ;;  %s4376_s1 = inlined_call_operand.hbm [shape: bf16[128,1024], index: 1, kind: input, shape index: {}]   ;;  %s4377_s2 = inlined_call_operand.hbm [shape: bf16[1024,256], index: 2, kind: input, shape index: {}]   ;;  %s4378_s3 = inlined_call_operand.vmem [shape: f32[1,256], index: 3, kind: input, shape index: {}]   ;;  %s4379_s4 = inlined_call_operand.hbm [shape: bf16[256,128], index: 4, kind: input, shape index: {}]   ;;  %s4380_s5 = inlined_call_operand.vmem [shape: f32[1,128], index: 5, kind: input, shape index: {}]   ;;  %s4381_s6 = inlined_call_operand.vmem [shape: f32[128,128], index: 6, kind: output, shape index: {}]  }
   0x1   :  { %12 = vsyncpa [#allocation5], 0  ;;  %s3778_s21 = smov [#allocation4]   ;;  %s3708_s25 = scalar_lea.hbm %s4377_s2, 16384 }
   0x2   :  { %s32_s22 = sshll.u32 %s3778_s21, 4  ;;  %p3709_p0 = scmp.ne.s32.totalorder %s4377_s2, %s3708_s25  ;;  %s33_s22 = int_to_ptr.vmem [resolvable:$true] %s32_s22 }
   0x3   :  { %p3712_p1 = scmp.lt.u32.totalorder %s3708_s25, %s4377_s2 }
   0x5   :  { %p3714_p2 = pnand %p3712_p1, %p3709_p0 }
   0x7   :  { %3717 = shalt.err (!%p3714_p2)
}
   0x8   :  { %s3718_s30 = scalar_lea.vmem %s33_s22, 16384  ;;  %p3723_p4 = scmp.lt.s32.totalorder %s33_s22, %s33_s22 }
   0x9   :  { %p3719_p3 = scmp.ne.s32.totalorder %s33_s22, %s3718_s30  ;;  %p3724_p5 = scmp.lt.s32.totalorder %s3718_s30, %s3718_s30 }
   0xb   :  { %p3725_p6 = por %p3724_p5, %p3723_p4 }
   0xd   :  { %p3726_p7 = pnand %p3725_p6, %p3719_p3 }
   0xf   :  { %3729 = shalt.err (!%p3726_p7)
}
  0x10   :  { %s3779_s7 = smov 128   ;;  %s3780_s8 = smov 8  }
  0x11   :  { %38 = dma.hbm_to_vmem [thread:$0]  %s4377_s2, 16384, %s33_s22, [#allocation5], %s3779_s7, %s3779_s7, %s3780_s8  }
  0x12   :  { %s3781_s11 = smov [#allocation2]   ;;  %s3730_s15 = scalar_lea.hbm %s4376_s1, 8192 }
  0x13   :  { %s20_s12 = sshll.u32 %s3781_s11, 4  ;;  %p3731_p8 = scmp.ne.s32.totalorder %s4376_s1, %s3730_s15  ;;  %s21_s12 = int_to_ptr.vmem [resolvable:$true] %s20_s12 }
  0x14   :  { %p3734_p9 = scmp.lt.u32.totalorder %s3730_s15, %s4376_s1 }
  0x16   :  { %p3736_p10 = pnand %p3734_p9, %p3731_p8 }
  0x18   :  { %3739 = shalt.err (!%p3736_p10)
}
  0x19   :  { %s3740_s20 = scalar_lea.vmem %s21_s12, 8192  ;;  %p3745_p12 = scmp.lt.s32.totalorder %s21_s12, %s21_s12 }
  0x1a   :  { %p3741_p11 = scmp.ne.s32.totalorder %s21_s12, %s3740_s20  ;;  %p3746_p13 = scmp.lt.s32.totalorder %s3740_s20, %s3740_s20 }
  0x1c   :  { %p3747_p0 = por %p3746_p13, %p3745_p12 }
  0x1e   :  { %p3748_p1 = pnand %p3747_p0, %p3741_p11 }
  0x20   :  { %3751 = shalt.err (!%p3748_p1)
}
  0x21   :  { %s3782_s2 = smov 512   ;;  %s3783_s21 = smov 32  }
  0x22   :  { %26 = dma.hbm_to_vmem [thread:$0]  %s4376_s1, 8192, %s21_s12, [#allocation3], %s3782_s2, %s3782_s2, %s3783_s21  }
  0x23   :  { %s3784_s24 = smov [#allocation6]   ;;  %s3752_s28 = scalar_lea.hbm %s4379_s4, 2048 }
  0x24   :  { %s46_s25 = sshll.u32 %s3784_s24, 4  ;;  %p3753_p2 = scmp.ne.s32.totalorder %s4379_s4, %s3752_s28  ;;  %s47_s25 = int_to_ptr.vmem [resolvable:$true] %s46_s25 }
  0x25   :  { %p3756_p3 = scmp.lt.u32.totalorder %s3752_s28, %s4379_s4 }
  0x27   :  { %p3758_p4 = pnand %p3756_p3, %p3753_p2 }
  0x29   :  { %3761 = shalt.err (!%p3758_p4)
}
  0x2a   :  { %s3762_s9 = scalar_lea.vmem %s47_s25, 2048  ;;  %p3767_p6 = scmp.lt.s32.totalorder %s47_s25, %s47_s25 }
  0x2b   :  { %p3763_p5 = scmp.ne.s32.totalorder %s47_s25, %s3762_s9  ;;  %p3768_p7 = scmp.lt.s32.totalorder %s3762_s9, %s3762_s9 }
  0x2d   :  { %p3769_p8 = por %p3768_p7, %p3767_p6 }
  0x2f   :  { %p3770_p9 = pnand %p3769_p8, %p3763_p5 }
  0x31   :  { %3773 = shalt.err (!%p3770_p9)
}
  0x32   :  { %s3785_s1 = smov 64   ;;  %s3786_s10 = smov 4  }
  0x33   :  { %52 = dma.hbm_to_vmem [thread:$0]  %s4379_s4, 2048, %s47_s25, [#allocation5], %s3785_s1, %s3785_s1, %s3786_s10  }
  0x34   :  { %3774 = dma.done.wait [#allocation3], 8192  }
  0x35   :  { %3775 = vsyncadd [#allocation3], 4294959104 }
  0x36   :  { %3776 = dma.done.wait [#allocation5], 18432  }
  0x37   :  { %3777 = vsyncadd [#allocation5], 4294948864  ;;  %v3787_v0 = vmov 0   ;;  %v81_v1 = vld [vmem:[#allocation2] sm:$0xff]  ;;  %v83_v26 = vld [vmem:[#allocation2 + $0x10] sm:$0xff] }
  0x38   :  { %545 = vmatprep.mubr.bf16.mxu1 %v3787_v0  ;;  %771 = vmatprep.mubr.bf16.mxu0 %v3787_v0  ;;  %v85_v2 = vld [vmem:[#allocation2 + $0x20] sm:$0xff]  ;;  %v87_v27 = vld [vmem:[#allocation2 + $0x30] sm:$0xff]  ;;  %v82_v45 = vld [vmem:[#allocation2 + $0x8] sm:$0xff] }
  0x39   :  { %v89_v3 = vld [vmem:[#allocation2 + $0x40] sm:$0xff]  ;;  %v2700_v4 = vcombine.high %v81_v1, %v85_v2  ;;  %v2699_v5 = vcombine.low %v81_v1, %v85_v2  ;;  %v91_v28 = vld [vmem:[#allocation2 + $0x50] sm:$0xff]  ;;  %v2704_v31 = vcombine.high %v83_v26, %v87_v27  ;;  %v2703_v32 = vcombine.low %v83_v26, %v87_v27  ;;  %v86_v46 = vld [vmem:[#allocation2 + $0x28] sm:$0xff] }
  0x3a   :  { %v93_v6 = vld [vmem:[#allocation2 + $0x60] sm:$0xff]  ;;  %v95_v29 = vld [vmem:[#allocation2 + $0x70] sm:$0xff]  ;;  %v90_v49 = vld [vmem:[#allocation2 + $0x48] sm:$0xff]  ;;  %v2702_v54 = vcombine.high %v82_v45, %v86_v46  ;;  %v2701_v59 = vcombine.low %v82_v45, %v86_v46 }
  0x3b   :  { %v2708_v7 = vcombine.high %v89_v3, %v93_v6  ;;  %v97_v8 = vld [vmem:[#allocation2 + $0x80] sm:$0xff]  ;;  %513 = vmatprep.subr.bf16.mxu1 %v2700_v4  ;;  %v2707_v10 = vcombine.low %v89_v3, %v93_v6  ;;  %v2712_v33 = vcombine.high %v91_v28, %v95_v29  ;;  %v99_v35 = vld [vmem:[#allocation2 + $0x90] sm:$0xff]  ;;  %739 = vmatprep.subr.bf16.mxu0 %v2704_v31  ;;  %v94_v50 = vld [vmem:[#allocation2 + $0x68] sm:$0xff] }
  0x3c   :  { %v101_v9 = vld [vmem:[#allocation2 + $0xa0] sm:$0xff]  ;;  %514 = vmatpush1.bf16.msra.mxu1 %v2699_v5  ;;  %v103_v36 = vld [vmem:[#allocation2 + $0xb0] sm:$0xff]  ;;  %740 = vmatpush1.bf16.msra.mxu0 %v2703_v32  ;;  %v2711_v39 = vcombine.low %v91_v28, %v95_v29  ;;  %v98_v60 = vld [vmem:[#allocation2 + $0x88] sm:$0xff]  ;;  %v2710_v62 = vcombine.high %v90_v49, %v94_v50  ;;  %v2709_v2 = vcombine.low %v90_v49, %v94_v50 }
  0x3d   :  { %515 = vmatprep.subr.bf16.mxu1 %v2708_v7  ;;  %v2716_v11 = vcombine.high %v97_v8, %v101_v9  ;;  %v105_v12 = vld [vmem:[#allocation2 + $0xc0] sm:$0xff]  ;;  %v2715_v14 = vcombine.low %v97_v8, %v101_v9  ;;  %741 = vmatprep.subr.bf16.mxu0 %v2712_v33  ;;  %v2720_v41 = vcombine.high %v99_v35, %v103_v36  ;;  %v107_v43 = vld [vmem:[#allocation2 + $0xd0] sm:$0xff]  ;;  %v102_v61 = vld [vmem:[#allocation2 + $0xa8] sm:$0xff] }
  0x3e   :  { %v109_v13 = vld [vmem:[#allocation2 + $0xe0] sm:$0xff]  ;;  %v111_v44 = vld [vmem:[#allocation2 + $0xf0] sm:$0xff]  ;;  %v2719_v47 = vcombine.low %v99_v35, %v103_v36  ;;  %v106_v3 = vld [vmem:[#allocation2 + $0xc8] sm:$0xff]  ;;  %v2718_v9 = vcombine.high %v98_v60, %v102_v61 }
  0x3f   :  { %v2724_v15 = vcombine.high %v105_v12, %v109_v13  ;;  %v113_v16 = vld [vmem:[#allocation2 + $0x100] sm:$0xff]  ;;  %v2723_v18 = vcombine.low %v105_v12, %v109_v13  ;;  %v2728_v51 = vcombine.high %v107_v43, %v111_v44  ;;  %v115_v52 = vld [vmem:[#allocation2 + $0x110] sm:$0xff]  ;;  %v2727_v56 = vcombine.low %v107_v43, %v111_v44  ;;  %v110_v4 = vld [vmem:[#allocation2 + $0xe8] sm:$0xff] }
  0x40   :  { %516 = vmatpush1.bf16.msra.mxu1 %v2707_v10  ;;  %v117_v17 = vld [vmem:[#allocation2 + $0x120] sm:$0xff]  ;;  %742 = vmatpush1.bf16.msra.mxu0 %v2711_v39  ;;  %v119_v55 = vld [vmem:[#allocation2 + $0x130] sm:$0xff]  ;;  %v3871_v8 = vld [vmem:[%s4375_s0 + $0x8] sm:$0xff]   ;;  %v2717_v13 = vcombine.low %v98_v60, %v102_v61 }
  0x41   :  { %517 = vmatprep.subr.bf16.mxu1 %v2716_v11  ;;  %v2732_v19 = vcombine.high %v113_v16, %v117_v17  ;;  %v121_v20 = vld [vmem:[#allocation2 + $0x140] sm:$0xff]  ;;  %v2731_v22 = vcombine.low %v113_v16, %v117_v17  ;;  %743 = vmatprep.subr.bf16.mxu0 %v2720_v41  ;;  %v123_v57 = vld [vmem:[#allocation2 + $0x150] sm:$0xff]  ;;  %v2736_v63 = vcombine.high %v115_v52, %v119_v55  ;;  %v130_v27 = vld [vmem:[#allocation2 + $0x188] sm:$0xff] }
  0x42   :  { %v125_v21 = vld [vmem:[#allocation2 + $0x160] sm:$0xff]  ;;  %v127_v58 = vld [vmem:[#allocation2 + $0x170] sm:$0xff]  ;;  %v2735_v1 = vcombine.low %v115_v52, %v119_v55  ;;  %v2726_v16 = vcombine.high %v106_v3, %v110_v4  ;;  %v134_v28 = vld [vmem:[#allocation2 + $0x1a8] sm:$0xff] }
  0x43   :  { %v2740_v23 = vcombine.high %v121_v20, %v125_v21  ;;  %v129_v24 = vld [vmem:[#allocation2 + $0x180] sm:$0xff]  ;;  %v2739_v30 = vcombine.low %v121_v20, %v125_v21  ;;  %v2744_v5 = vcombine.high %v123_v57, %v127_v58  ;;  %v131_v6 = vld [vmem:[#allocation2 + $0x190] sm:$0xff]  ;;  %v2743_v10 = vcombine.low %v123_v57, %v127_v58  ;;  %v122_v20 = vld [vmem:[#allocation2 + $0x148] sm:$0xff] }
  0x44   :  { %518 = vmatpush1.bf16.msra.mxu1 %v2715_v14  ;;  %v133_v25 = vld [vmem:[#allocation2 + $0x1a0] sm:$0xff]  ;;  %744 = vmatpush1.bf16.msra.mxu0 %v2719_v47  ;;  %v135_v7 = vld [vmem:[#allocation2 + $0x1b0] sm:$0xff]  ;;  %v114_v14 = vld [vmem:[#allocation2 + $0x108] sm:$0xff]  ;;  %v2749_v35 = vcombine.low %v130_v27, %v134_v28 }
  0x45   :  { %519 = vmatprep.subr.bf16.mxu1 %v2724_v15  ;;  %v2748_v34 = vcombine.high %v129_v24, %v133_v25  ;;  %v137_v37 = vld [vmem:[#allocation2 + $0x1c0] sm:$0xff]  ;;  %v2747_v40 = vcombine.low %v129_v24, %v133_v25  ;;  %745 = vmatprep.subr.bf16.mxu0 %v2728_v51  ;;  %v139_v11 = vld [vmem:[#allocation2 + $0x1d0] sm:$0xff]  ;;  %v118_v15 = vld [vmem:[#allocation2 + $0x128] sm:$0xff]  ;;  %v2752_v17 = vcombine.high %v131_v6, %v135_v7 }
  0x46   :  { %v141_v38 = vld [vmem:[#allocation2 + $0x1e0] sm:$0xff]  ;;  %v143_v12 = vld [vmem:[#allocation2 + $0x1f0] sm:$0xff]  ;;  %v126_v21 = vld [vmem:[#allocation2 + $0x168] sm:$0xff]  ;;  %v2734_v24 = vcombine.high %v114_v14, %v118_v15  ;;  %v2733_v26 = vcombine.low %v114_v14, %v118_v15 }
  0x47   :  { %v2756_v42 = vcombine.high %v137_v37, %v141_v38  ;;  %v2755_v48 = vcombine.low %v137_v37, %v141_v38  ;;  %v3864_v53 = vld [vmem:[%s4375_s0] sm:$0xff]   ;;  %v2759_v25 = vcombine.low %v139_v11, %v143_v12  ;;  %v2742_v29 = vcombine.high %v122_v20, %v126_v21  ;;  %v138_v31 = vld [vmem:[#allocation2 + $0x1c8] sm:$0xff]  ;;  %v3885_v33 = vld [vmem:[%s4375_s0 + $0x18] sm:$0xff]  }
  0x48   :  { %520 = vmatpush1.bf16.msra.mxu1 %v2723_v18  ;;  %746 = vmatpush1.bf16.msra.mxu0 %v2727_v56  ;;  %v2751_v18 = vcombine.low %v131_v6, %v135_v7  ;;  %v142_v32 = vld [vmem:[#allocation2 + $0x1e8] sm:$0xff]  ;;  %v3889_v36 = vld [vmem:[#allocation2 + $0x18] sm:$0xff]  ;;  %v3918_v50 = vld [vmem:[%s4375_s0 + $0x30] sm:$0xff]  }
  0x49   :  { %521 = vmatprep.subr.bf16.mxu1 %v2732_v19  ;;  %747 = vmatprep.subr.bf16.mxu0 %v2736_v63  ;;  %v2725_v19 = vcombine.low %v106_v3, %v110_v4  ;;  %v3891_v37 = vld [vmem:[#allocation2 + $0x38] sm:$0xff]  ;;  %v2758_v38 = vcombine.high %v138_v31, %v142_v32  ;;  %v2757_v39 = vcombine.low %v138_v31, %v142_v32  ;;  %v3152_v43 = vld [vmem:[#allocation4 + $0x4] ss:$8 sps:$4 sm:$0xff]   ;;  %v3156_v47 = vld [vmem:[#allocation4 + $0x20] ss:$8 sps:$4 sm:$0xff]  }
  0x4a   :  { %v2706_v41 = vcombine.high %v3889_v36, %v3891_v37  ;;  %v3155_v44 = vld [vmem:[#allocation4 + $0x14] ss:$8 sps:$4 sm:$0xff]   ;;  %v3909_v45 = vld [vmem:[%s4375_s0 + $0x28] sm:$0xff]   ;;  %v3153_v46 = vld [vmem:[#allocation4 + $0x10] ss:$8 sps:$4 sm:$0xff]  }
  0x4b   :  { %v3161_v49 = vld [vmem:[#allocation4 + $0x34] ss:$8 sps:$4 sm:$0xff]   ;;  %v3159_v51 = vld [vmem:[#allocation4 + $0x30] ss:$8 sps:$4 sm:$0xff]   ;;  %v3162_v52 = vld [vmem:[#allocation4 + $0x40] ss:$8 sps:$4 sm:$0xff]  }
  0x4c   :  { %522 = vmatpush1.bf16.msra.mxu1 %v2731_v22  ;;  %748 = vmatpush1.bf16.msra.mxu0 %v2735_v1  ;;  %v2760_v22 = vcombine.high %v139_v11, %v143_v12  ;;  %v3167_v55 = vld [vmem:[#allocation4 + $0x54] ss:$8 sps:$4 sm:$0xff]   ;;  %v3165_v57 = vld [vmem:[#allocation4 + $0x50] ss:$8 sps:$4 sm:$0xff]   ;;  %v3168_v58 = vld [vmem:[#allocation4 + $0x60] ss:$8 sps:$4 sm:$0xff]   ;;  %v2705_v1 = vcombine.low %v3889_v36, %v3891_v37 }
  0x4d   :  { %523 = vmatprep.subr.bf16.mxu1 %v2740_v23  ;;  %749 = vmatprep.subr.bf16.mxu0 %v2744_v5  ;;  %v3878_v23 = vld [vmem:[%s4375_s0 + $0x10] sm:$0xff]   ;;  %v3928_v56 = vld [vmem:[%s4375_s0 + $0x38] sm:$0xff]   ;;  %v3176_v3 = vld [vmem:[#allocation4 + $0x84] ss:$8 sps:$4 sm:$0xff]  }
  0x4e   :  { %v3173_v60 = vld [vmem:[#allocation4 + $0x74] ss:$8 sps:$4 sm:$0xff]   ;;  %v3171_v63 = vld [vmem:[#allocation4 + $0x70] ss:$8 sps:$4 sm:$0xff]   ;;  %v3174_v6 = vld [vmem:[#allocation4 + $0x80] ss:$8 sps:$4 sm:$0xff]  }
  0x4f   :  { %v92_v61 = vld [vmem:[#allocation2 + $0x58] sm:$0xff]  ;;  %v3188_v36 = vld [vmem:[#allocation4 + $0xc4] ss:$8 sps:$4 sm:$0xff]   ;;  %v3186_v37 = vld [vmem:[#allocation4 + $0xc0] ss:$8 sps:$4 sm:$0xff]  }
  0x50   :  { %524 = vmatpush1.bf16.msra.mxu1 %v2739_v30  ;;  %750 = vmatpush1.bf16.msra.mxu0 %v2743_v10  ;;  %v2741_v30 = vcombine.low %v122_v20, %v126_v21  ;;  %v100_v4 = vld [vmem:[#allocation2 + $0x98] sm:$0xff] }
  0x51   :  { %525 = vmatprep.subr.bf16.mxu1 %v2748_v34  ;;  %751 = vmatprep.subr.bf16.mxu0 %v2752_v17  ;;  %v2750_v34 = vcombine.high %v130_v27, %v134_v28  ;;  %v104_v5 = vld [vmem:[#allocation2 + $0xb8] sm:$0xff] }
  0x52   :  { %v2722_v10 = vcombine.high %v100_v4, %v104_v5  ;;  %v108_v11 = vld [vmem:[#allocation2 + $0xd8] sm:$0xff]  ;;  %v2721_v14 = vcombine.low %v100_v4, %v104_v5 }
  0x53   :  { %v112_v12 = vld [vmem:[#allocation2 + $0xf8] sm:$0xff] }
  0x54   :  { %526 = vmatpush1.bf16.msra.mxu1 %v2747_v40  ;;  %752 = vmatpush1.bf16.msra.mxu0 %v2751_v18  ;;  %v3898_v40 = vld [vmem:[%s4375_s0 + $0x20] sm:$0xff]   ;;  %v2730_v15 = vcombine.high %v108_v11, %v112_v12  ;;  %v116_v17 = vld [vmem:[#allocation2 + $0x118] sm:$0xff]  ;;  %v2729_v20 = vcombine.low %v108_v11, %v112_v12 }
  0x55   :  { %527 = vmatprep.subr.bf16.mxu1 %v2756_v42  ;;  %753 = vmatprep.subr.bf16.mxu0 %v2760_v22  ;;  %v3150_v42 = vld [vmem:[#allocation4] ss:$8 sps:$4 sm:$0xff]   ;;  %v120_v18 = vld [vmem:[#allocation2 + $0x138] sm:$0xff] }
  0x56   :  { %v3185_v21 = vld [vmem:[#allocation4 + $0xb4] ss:$8 sps:$4 sm:$0xff]   ;;  %v2738_v22 = vcombine.high %v116_v17, %v120_v18  ;;  %v2737_v27 = vcombine.low %v116_v17, %v120_v18  ;;  %v3198_v11 = vld [vmem:[#allocation4 + $0x100] ss:$8 sps:$4 sm:$0xff]   ;;  %v3315_v12 = vld [vmem:[#allocation4 + $0x370] ss:$8 sps:$4 sm:$0xff]  }
  0x57   :  { %v3320_v17 = vld [vmem:[#allocation4 + $0x384] ss:$8 sps:$4 sm:$0xff]  }
  0x58   :  { %528 = vmatpush1.bf16.msra.mxu1 %v2755_v48  ;;  %754 = vmatpush1.bf16.msra.mxu0 %v2759_v25  ;;  %v3158_v48 = vld [vmem:[#allocation4 + $0x24] ss:$8 sps:$4 sm:$0xff]   ;;  %v128_v25 = vld [vmem:[#allocation2 + $0x178] sm:$0xff] }
  0x59   :  { %626 = vmatprep.subr.bf16.mxu1 %v2702_v54  ;;  %1937 = vmatprep.subr.bf16.mxu0 %v3152_v43  ;;  %v3164_v54 = vld [vmem:[#allocation4 + $0x44] ss:$8 sps:$4 sm:$0xff]  }
  0x5b   :  { %546 = vmatmul.mubr.bf16.vlgmr.msra.gmra.mrb[0].mxu1 %v3864_v53  ;;  %772 = vmatmul.mubr.bf16.vlgmr.msra.gmra.mrb[0].mxu0 %v3864_v53 }
  0x5c   :  { %627 = vmatpush1.bf16.msra.mxu1 %v2701_v59  ;;  %555 = vmatprep.mubr.bf16.mxu1 %v3787_v0  ;;  %v3170_v59 = vld [vmem:[#allocation4 + $0x64] ss:$8 sps:$4 sm:$0xff]  }
  0x5d   :  { %628 = vmatprep.subr.bf16.mxu1 %v2710_v62  ;;  %781 = vmatprep.mubr.bf16.mxu0 %v3787_v0  ;;  %v96_v62 = vld [vmem:[#allocation2 + $0x78] sm:$0xff] }
  0x5e   :  { %1938 = vmatpush1.bf16.msra.mxu0 %v3150_v42  ;;  %v2713_v7 = vcombine.low %v92_v61, %v96_v62  ;;  %v3189_v42 = vld [vmem:[#allocation4 + $0xd0] ss:$8 sps:$4 sm:$0xff]  }
  0x5f   :  { %1939 = vmatprep.subr.bf16.mxu0 %v3155_v44  ;;  %v3194_v44 = vld [vmem:[#allocation4 + $0xe4] ss:$8 sps:$4 sm:$0xff]  }
  0x60   :  { %629 = vmatpush1.bf16.msra.mxu1 %v2709_v2  ;;  %v2714_v2 = vcombine.high %v92_v61, %v96_v62 }
  0x61   :  { %630 = vmatprep.subr.bf16.mxu1 %v2718_v9  ;;  %v3179_v9 = vld [vmem:[#allocation4 + $0x94] ss:$8 sps:$4 sm:$0xff]  }
  0x62   :  { %1940 = vmatpush1.bf16.msra.mxu0 %v3153_v46  ;;  %v3192_v46 = vld [vmem:[#allocation4 + $0xe0] ss:$8 sps:$4 sm:$0xff]  }
  0x63   :  { %556 = vmatmul.mubr.bf16.gmra.mrb[4].mxu1 %v3871_v8  ;;  %782 = vmatmul.mubr.bf16.gmra.mrb[4].mxu0 %v3871_v8 }
  0x64   :  { %565 = vmatprep.mubr.bf16.mxu1 %v3787_v0  ;;  %631 = vmatpush1.bf16.msra.mxu1 %v2717_v13  ;;  %v3177_v13 = vld [vmem:[#allocation4 + $0x90] ss:$8 sps:$4 sm:$0xff]  }
  0x65   :  { %632 = vmatprep.subr.bf16.mxu1 %v2726_v16  ;;  %791 = vmatprep.mubr.bf16.mxu0 %v3787_v0  ;;  %v3182_v16 = vld [vmem:[#allocation4 + $0xa4] ss:$8 sps:$4 sm:$0xff]  }
  0x66   :  { %1941 = vmatprep.subr.bf16.mxu0 %v3158_v48  ;;  %v3195_v48 = vld [vmem:[#allocation4 + $0xf0] ss:$8 sps:$4 sm:$0xff]  }
  0x67   :  { %1942 = vmatpush1.bf16.msra.mxu0 %v3156_v47  ;;  %v3197_v47 = vld [vmem:[#allocation4 + $0xf4] ss:$8 sps:$4 sm:$0xff]  }
  0x68   :  { %633 = vmatpush1.bf16.msra.mxu1 %v2725_v19  ;;  %1943 = vmatprep.subr.bf16.mxu0 %v3161_v49  ;;  %v3180_v19 = vld [vmem:[#allocation4 + $0xa0] ss:$8 sps:$4 sm:$0xff]   ;;  %v3200_v49 = vld [vmem:[#allocation4 + $0x104] ss:$8 sps:$4 sm:$0xff]  }
  0x69   :  { %634 = vmatprep.subr.bf16.mxu1 %v2734_v24  ;;  %v124_v24 = vld [vmem:[#allocation2 + $0x158] sm:$0xff] }
  0x6a   :  { %v2746_v28 = vcombine.high %v124_v24, %v128_v25  ;;  %v2745_v31 = vcombine.low %v124_v24, %v128_v25  ;;  %v3206_v25 = vld [vmem:[#allocation4 + $0x124] ss:$8 sps:$4 sm:$0xff]  }
  0x6b   :  { %566 = vmatmul.mubr.bf16.gmra.mrb[8].mxu1 %v3878_v23  ;;  %792 = vmatmul.mubr.bf16.gmra.mrb[8].mxu0 %v3878_v23 }
  0x6c   :  { %575 = vmatprep.mubr.bf16.mxu1 %v3787_v0  ;;  %635 = vmatpush1.bf16.msra.mxu1 %v2733_v26  ;;  %v3183_v26 = vld [vmem:[#allocation4 + $0xb0] ss:$8 sps:$4 sm:$0xff]  }
  0x6d   :  { %636 = vmatprep.subr.bf16.mxu1 %v2742_v29  ;;  %801 = vmatprep.mubr.bf16.mxu0 %v3787_v0  ;;  %v132_v29 = vld [vmem:[#allocation2 + $0x198] sm:$0xff] }
  0x6e   :  { %1944 = vmatpush1.bf16.msra.mxu0 %v3159_v51  ;;  %v3285_v51 = vld [vmem:[#allocation4 + $0x320] ss:$8 sps:$4 sm:$0xff]  }
  0x6f   :  { %1945 = vmatprep.subr.bf16.mxu0 %v3164_v54 }
  0x70   :  { %637 = vmatpush1.bf16.msra.mxu1 %v2741_v30  ;;  %v136_v30 = vld [vmem:[#allocation2 + $0x1b8] sm:$0xff] }
  0x71   :  { %638 = vmatprep.subr.bf16.mxu1 %v2750_v34  ;;  %v2754_v32 = vcombine.high %v132_v29, %v136_v30  ;;  %v140_v34 = vld [vmem:[#allocation2 + $0x1d8] sm:$0xff] }
  0x72   :  { %1946 = vmatpush1.bf16.msra.mxu0 %v3162_v52  ;;  %v3291_v52 = vld [vmem:[#allocation4 + $0x330] ss:$8 sps:$4 sm:$0xff]  }
  0x73   :  { %576 = vmatmul.mubr.bf16.gmra.mrb[12].mxu1 %v3885_v33  ;;  %802 = vmatmul.mubr.bf16.gmra.mrb[12].mxu0 %v3885_v33 }
  0x74   :  { %585 = vmatprep.mubr.bf16.mxu1 %v3787_v0  ;;  %639 = vmatpush1.bf16.msra.mxu1 %v2749_v35  ;;  %v144_v35 = vld [vmem:[#allocation2 + $0x1f8] sm:$0xff] }
  0x75   :  { %640 = vmatprep.subr.bf16.mxu1 %v2758_v38  ;;  %811 = vmatprep.mubr.bf16.mxu0 %v3787_v0  ;;  %v2753_v38 = vcombine.low %v132_v29, %v136_v30  ;;  %v2761_v43 = vcombine.low %v140_v34, %v144_v35 }
  0x76   :  { %1947 = vmatprep.subr.bf16.mxu0 %v3167_v55  ;;  %v3299_v55 = vld [vmem:[#allocation4 + $0x344] ss:$8 sps:$4 sm:$0xff]  }
  0x77   :  { %1948 = vmatpush1.bf16.msra.mxu0 %v3165_v57  ;;  %v3297_v57 = vld [vmem:[#allocation4 + $0x340] ss:$8 sps:$4 sm:$0xff]  }
  0x78   :  { %641 = vmatpush1.bf16.msra.mxu1 %v2757_v39  ;;  %1949 = vmatprep.subr.bf16.mxu0 %v3170_v59  ;;  %v2762_v39 = vcombine.high %v140_v34, %v144_v35  ;;  %v3303_v59 = vld [vmem:[#allocation4 + $0x350] ss:$8 sps:$4 sm:$0xff]   ;;  %v3204_v35 = vld [vmem:[#allocation4 + $0x120] ss:$8 sps:$4 sm:$0xff]  }
  0x79   :  { %852 = vmatprep.subr.bf16.mxu1 %v2706_v41  ;;  %v3191_v41 = vld [vmem:[#allocation4 + $0xd4] ss:$8 sps:$4 sm:$0xff]  }
  0x7b   :  { %586 = vmatmul.mubr.bf16.gmra.mrb[16].mxu1 %v3898_v40  ;;  %812 = vmatmul.mubr.bf16.gmra.mrb[16].mxu0 %v3898_v40 }
  0x7c   :  { %595 = vmatprep.mubr.bf16.mxu1 %v3787_v0  ;;  %821 = vmatprep.mubr.bf16.mxu0 %v3787_v0 }
  0x7d   :  { %1950 = vmatpush1.bf16.msra.mxu0 %v3168_v58  ;;  %v3305_v58 = vld [vmem:[#allocation4 + $0x354] ss:$8 sps:$4 sm:$0xff]  }
  0x7e   :  { %1951 = vmatprep.subr.bf16.mxu0 %v3173_v60 }
  0x81   :  { %1952 = vmatpush1.bf16.msra.mxu0 %v3171_v63  ;;  %v3311_v63 = vld [vmem:[#allocation4 + $0x364] ss:$8 sps:$4 sm:$0xff]  }
  0x82   :  { %1953 = vmatprep.subr.bf16.mxu0 %v3176_v3  ;;  %v3309_v3 = vld [vmem:[#allocation4 + $0x360] ss:$8 sps:$4 sm:$0xff]  }
  0x83   :  { %596 = vmatmul.mubr.bf16.gmra.mrb[20].mxu1 %v3909_v45  ;;  %822 = vmatmul.mubr.bf16.gmra.mrb[20].mxu0 %v3909_v45 }
  0x84   :  { %605 = vmatprep.mubr.bf16.mxu1 %v3787_v0  ;;  %831 = vmatprep.mubr.bf16.mxu0 %v3787_v0 }
  0x85   :  { %1954 = vmatpush1.bf16.msra.mxu0 %v3174_v6 }
  0x86   :  { %1955 = vmatprep.subr.bf16.mxu0 %v3179_v9  ;;  %v3317_v9 = vld [vmem:[#allocation4 + $0x374] ss:$8 sps:$4 sm:$0xff]  }
  0x89   :  { %1956 = vmatpush1.bf16.msra.mxu0 %v3177_v13 }
  0x8a   :  { %1957 = vmatprep.subr.bf16.mxu0 %v3182_v16 }
  0x8b   :  { %606 = vmatmul.mubr.bf16.gmra.mrb[24].mxu1 %v3918_v50  ;;  %832 = vmatmul.mubr.bf16.gmra.mrb[24].mxu0 %v3918_v50 }
  0x8c   :  { %615 = vmatprep.mubr.bf16.mxu1 %v3787_v0  ;;  %841 = vmatprep.mubr.bf16.mxu0 %v3787_v0 }
  0x8d   :  { %1958 = vmatpush1.bf16.msra.mxu0 %v3180_v19 }
  0x8e   :  { %1959 = vmatprep.subr.bf16.mxu0 %v3185_v21 }
  0x91   :  { %1960 = vmatpush1.bf16.msra.mxu0 %v3183_v26 }
  0x92   :  { %1961 = vmatprep.subr.bf16.mxu0 %v3188_v36  ;;  %v3321_v36 = vld [vmem:[#allocation4 + $0x390] ss:$8 sps:$4 sm:$0xff]  }
  0x93   :  { %616 = vmatmul.mubr.bf16.gmra.mrb[28].mxu1 %v3928_v56  ;;  %842 = vmatmul.mubr.bf16.gmra.mrb[28].mxu0 %v3928_v56 }
  0x94   :  { %658 = vmatprep.mubr.bf16.mxu1 %v3787_v0 }
  0x95   :  { %1962 = vmatpush1.bf16.msra.mxu0 %v3186_v37 }
  0x96   :  { %1963 = vmatprep.subr.bf16.mxu0 %v3191_v41 }
  0x99   :  { %1964 = vmatpush1.bf16.msra.mxu0 %v3189_v42  ;;  %v3326_v42 = vld [vmem:[#allocation4 + $0x3a4] ss:$8 sps:$4 sm:$0xff]  }
  0x9a   :  { %1965 = vmatprep.subr.bf16.mxu0 %v3194_v44 }
  0x9b   :  { %659 = vmatmul.mubr.bf16.vlgmr.msra.gmra.mrb[32].mxu1 %v3864_v53 }
  0x9c   :  { %668 = vmatprep.mubr.bf16.mxu1 %v3787_v0  ;;  %853 = vmatpush1.bf16.msra.mxu1 %v2705_v1 }
  0x9d   :  { %854 = vmatprep.subr.bf16.mxu1 %v2714_v2  ;;  %1966 = vmatpush1.bf16.msra.mxu0 %v3192_v46  ;;  %v3207_v46 = vld [vmem:[#allocation4 + $0x130] ss:$8 sps:$4 sm:$0xff]  }
  0x9e   :  { %1967 = vmatprep.subr.bf16.mxu0 %v3197_v47 }
  0xa0   :  { %855 = vmatpush1.bf16.msra.mxu1 %v2713_v7 }
  0xa1   :  { %856 = vmatprep.subr.bf16.mxu1 %v2722_v10  ;;  %1968 = vmatpush1.bf16.msra.mxu0 %v3195_v48  ;;  %v3324_v48 = vld [vmem:[#allocation4 + $0x3a0] ss:$8 sps:$4 sm:$0xff]  }
  0xa2   :  { %2050 = vmatprep.subr.bf16.mxu0 %v3200_v49 }
  0xa3   :  { %669 = vmatmul.mubr.bf16.gmra.mrb[36].mxu1 %v3871_v8 }
  0xa4   :  { %678 = vmatprep.mubr.bf16.mxu1 %v3787_v0  ;;  %857 = vmatpush1.bf16.msra.mxu1 %v2721_v14  ;;  %v3203_v14 = vld [vmem:[#allocation4 + $0x114] ss:$8 sps:$4 sm:$0xff]  }
  0xa5   :  { %858 = vmatprep.subr.bf16.mxu1 %v2730_v15 }
  0xa8   :  { %859 = vmatpush1.bf16.msra.mxu1 %v2729_v20  ;;  %v3201_v20 = vld [vmem:[#allocation4 + $0x110] ss:$8 sps:$4 sm:$0xff]  }
  0xa9   :  { %860 = vmatprep.subr.bf16.mxu1 %v2738_v22  ;;  %v3318_v22 = vld [vmem:[#allocation4 + $0x380] ss:$8 sps:$4 sm:$0xff]  }
  0xab   :  { %679 = vmatmul.mubr.bf16.gmra.mrb[40].mxu1 %v3878_v23 }
  0xac   :  { %688 = vmatprep.mubr.bf16.mxu1 %v3787_v0  ;;  %861 = vmatpush1.bf16.msra.mxu1 %v2737_v27 }
  0xad   :  { %862 = vmatprep.subr.bf16.mxu1 %v2746_v28 }
  0xb0   :  { %863 = vmatpush1.bf16.msra.mxu1 %v2745_v31 }
  0xb1   :  { %864 = vmatprep.subr.bf16.mxu1 %v2754_v32  ;;  %v3323_v32 = vld [vmem:[#allocation4 + $0x394] ss:$8 sps:$4 sm:$0xff]  }
  0xb3   :  { %689 = vmatmul.mubr.bf16.gmra.mrb[44].mxu1 %v3885_v33 }
  0xb4   :  { %698 = vmatprep.mubr.bf16.mxu1 %v3787_v0  ;;  %865 = vmatpush1.bf16.msra.mxu1 %v2753_v38  ;;  %v3209_v38 = vld [vmem:[#allocation4 + $0x134] ss:$8 sps:$4 sm:$0xff]  }
  0xb5   :  { %866 = vmatprep.subr.bf16.mxu1 %v2762_v39 }
  0xb8   :  { %867 = vmatpush1.bf16.msra.mxu1 %v2761_v43 }
  0xbb   :  { %699 = vmatmul.mubr.bf16.gmra.mrb[48].mxu1 %v3898_v40 }
  0xbc   :  { %708 = vmatprep.mubr.bf16.mxu1 %v3787_v0 }
  0xc3   :  { %709 = vmatmul.mubr.bf16.gmra.mrb[52].mxu1 %v3909_v45 }
  0xc4   :  { %718 = vmatprep.mubr.bf16.mxu1 %v3787_v0 }
  0xcb   :  { %719 = vmatmul.mubr.bf16.gmra.mrb[56].mxu1 %v3918_v50 }
  0xcc   :  { %728 = vmatprep.mubr.bf16.mxu1 %v3787_v0 }
  0xd3   :  { %729 = vmatmul.mubr.bf16.gmra.mrb[60].mxu1 %v3928_v56 }
  0xd4   :  { %884 = vmatprep.mubr.bf16.mxu1 %v3787_v0 }
  0xdb   :  { %885 = vmatmul.mubr.bf16.vlgmr.msra.gmra.mrb[64].mxu1 %v3864_v53  ;;  %v3275_v53 = vld [vmem:[#allocation4 + $0x304] ss:$8 sps:$4 sm:$0xff]  }
  0xdc   :  { %894 = vmatprep.mubr.bf16.mxu1 %v3787_v0  ;;  %2972 = vmatprep.subr.bf16.mxu1 %v3275_v53  ;;  %v3212_v53 = vld [vmem:[#allocation4 + $0x144] ss:$8 sps:$4 sm:$0xff]  }
  0xe3   :  { %895 = vmatmul.mubr.bf16.gmra.mrb[68].mxu1 %v3871_v8  ;;  %v3273_v8 = vld [vmem:[#allocation4 + $0x300] ss:$8 sps:$4 sm:$0xff]  }
  0xe4   :  { %904 = vmatprep.mubr.bf16.mxu1 %v3787_v0  ;;  %2988 = vmatpush1.bf16.msra.mxu1 %v3273_v8 }
  0xeb   :  { %905 = vmatmul.mubr.bf16.gmra.mrb[72].mxu1 %v3878_v23  ;;  %v3281_v23 = vld [vmem:[#allocation4 + $0x314] ss:$8 sps:$4 sm:$0xff]  }
  0xec   :  { %914 = vmatprep.mubr.bf16.mxu1 %v3787_v0  ;;  %2973 = vmatprep.subr.bf16.mxu1 %v3281_v23 }
  0xf3   :  { %915 = vmatmul.mubr.bf16.gmra.mrb[76].mxu1 %v3885_v33  ;;  %v3279_v33 = vld [vmem:[#allocation4 + $0x310] ss:$8 sps:$4 sm:$0xff]  }
  0xf4   :  { %924 = vmatprep.mubr.bf16.mxu1 %v3787_v0  ;;  %2989 = vmatpush1.bf16.msra.mxu1 %v3279_v33 }
  0xfb   :  { %925 = vmatmul.mubr.bf16.gmra.mrb[80].mxu1 %v3898_v40  ;;  %v3287_v40 = vld [vmem:[#allocation4 + $0x324] ss:$8 sps:$4 sm:$0xff]  }
  0xfc   :  { %934 = vmatprep.mubr.bf16.mxu1 %v3787_v0  ;;  %2974 = vmatprep.subr.bf16.mxu1 %v3287_v40 }
  0xfd   :  { %2990 = vmatpush1.bf16.msra.mxu1 %v3285_v51 }
 0x103   :  { %935 = vmatmul.mubr.bf16.gmra.mrb[84].mxu1 %v3909_v45  ;;  %v3293_v45 = vld [vmem:[#allocation4 + $0x334] ss:$8 sps:$4 sm:$0xff]  }
 0x104   :  { %944 = vmatprep.mubr.bf16.mxu1 %v3787_v0  ;;  %2975 = vmatprep.subr.bf16.mxu1 %v3293_v45 }
 0x105   :  { %2991 = vmatpush1.bf16.msra.mxu1 %v3291_v52  ;;  %v3329_v52 = vld [vmem:[#allocation4 + $0x3b4] ss:$8 sps:$4 sm:$0xff]  }
 0x106   :  { %2976 = vmatprep.subr.bf16.mxu1 %v3299_v55  ;;  %v3327_v55 = vld [vmem:[#allocation4 + $0x3b0] ss:$8 sps:$4 sm:$0xff]  }
 0x109   :  { %2992 = vmatpush1.bf16.msra.mxu1 %v3297_v57 }
 0x10a   :  { %2977 = vmatprep.subr.bf16.mxu1 %v3305_v58  ;;  %v3215_v58 = vld [vmem:[#allocation4 + $0x154] ss:$8 sps:$4 sm:$0xff]  }
 0x10b   :  { %945 = vmatmul.mubr.bf16.gmra.mrb[88].mxu1 %v3918_v50 }
 0x10c   :  { %954 = vmatprep.mubr.bf16.mxu1 %v3787_v0 }
 0x10d   :  { %2993 = vmatpush1.bf16.msra.mxu1 %v3303_v59 }
 0x10e   :  { %2978 = vmatprep.subr.bf16.mxu1 %v3311_v63 }
 0x111   :  { %2994 = vmatpush1.bf16.msra.mxu1 %v3309_v3 }
 0x112   :  { %2979 = vmatprep.subr.bf16.mxu1 %v3317_v9 }
 0x113   :  { %955 = vmatmul.mubr.bf16.gmra.mrb[92].mxu1 %v3928_v56 }
 0x115   :  { %2995 = vmatpush1.bf16.msra.mxu1 %v3315_v12 }
 0x116   :  { %2980 = vmatprep.subr.bf16.mxu1 %v3320_v17  ;;  %v3335_v17 = vld [vmem:[#allocation4 + $0x3d4] ss:$8 sps:$4 sm:$0xff]  }
 0x119   :  { %2996 = vmatpush1.bf16.msra.mxu1 %v3318_v22 }
 0x11a   :  { %2981 = vmatprep.subr.bf16.mxu1 %v3323_v32 }
 0x11d   :  { %2997 = vmatpush1.bf16.msra.mxu1 %v3321_v36 }
 0x11e   :  { %2982 = vmatprep.subr.bf16.mxu1 %v3326_v42 }
 0x121   :  { %2998 = vmatpush1.bf16.msra.mxu1 %v3324_v48 }
 0x122   :  { %2983 = vmatprep.subr.bf16.mxu1 %v3329_v52 }
 0x125   :  { %2999 = vmatpush1.bf16.msra.mxu1 %v3327_v55 }
 0x12e   :  { %v547_v54 = vpop.f32.mrb[0].mxu1  ;;  %v773_v21 = vpop.f32.mrb[0].mxu0 }
 0x12f   :  { %3358 = vtanh.f32 %v547_v54  ;;  %v549_v0 = vpop.f32.mrb[1].mxu1  ;;  %v775_v26 = vpop.f32.mrb[1].mxu0 }
 0x130   :  { %3360 = vtanh.f32 %v549_v0  ;;  %v551_v50 = vpop.f32.mrb[2].mxu1  ;;  %v777_v28 = vpop.f32.mrb[2].mxu0 }
 0x131   :  { %3362 = vtanh.f32 %v551_v50  ;;  %v553_v56 = vpop.f32.mrb[3].mxu1  ;;  %v779_v31 = vpop.f32.mrb[3].mxu0  ;;  %v3210_v50 = vld [vmem:[#allocation4 + $0x140] ss:$8 sps:$4 sm:$0xff]  }
 0x132   :  { %3364 = vtanh.f32 %v553_v56 }
 0x136   :  { %v557_v60 = vpop.f32.mrb[4].mxu1  ;;  %v783_v47 = vpop.f32.mrb[4].mxu0 }
 0x137   :  { %3366 = vtanh.f32 %v557_v60  ;;  %v559_v61 = vpop.f32.mrb[5].mxu1  ;;  %v785_v8 = vpop.f32.mrb[5].mxu0 }
 0x138   :  { %3368 = vtanh.f32 %v559_v61  ;;  %v561_v62 = vpop.f32.mrb[6].mxu1  ;;  %v787_v33 = vpop.f32.mrb[6].mxu0 }
 0x139   :  { %v3359_v1 = vpop.eup %3358  ;;  %3370 = vtanh.f32 %v561_v62  ;;  %v563_v2 = vpop.f32.mrb[7].mxu1 }
 0x13a   :  { %v3361_v4 = vpop.eup %3360  ;;  %3372 = vtanh.f32 %v563_v2  ;;  %v789_v45 = vpop.f32.mrb[7].mxu0 }
 0x13b   :  { %v3363_v5 = vpop.eup %3362 }
 0x13c   :  { %v3365_v6 = vpop.eup %3364  ;;  %v1093_v7 = vpack.c.bf16 %v3363_v5, %v3359_v1  ;;  %v3332_v1 = vld [vmem:[#allocation4 + $0x3c4] ss:$8 sps:$4 sm:$0xff]  }
 0x13d   :  { %v1094_v10 = vpack.c.bf16 %v3365_v6, %v3361_v4  ;;  %v3213_v4 = vld [vmem:[#allocation4 + $0x150] ss:$8 sps:$4 sm:$0xff]   ;;  %2984 = vmatprep.subr.bf16.mxu1 %v3332_v1 }
 0x13e   :  { %v567_v13 = vpop.f32.mrb[8].mxu1  ;;  %v793_v5 = vpop.f32.mrb[8].mxu0 }
 0x13f   :  { %3374 = vtanh.f32 %v567_v13  ;;  %v569_v15 = vpop.f32.mrb[9].mxu1  ;;  %1969 = vmatprep.mubr.bf16.mxu0 %v1094_v10  ;;  %v3218_v10 = vld [vmem:[#allocation4 + $0x164] ss:$8 sps:$4 sm:$0xff]  }
 0x140   :  { %3376 = vtanh.f32 %v569_v15  ;;  %v571_v16 = vpop.f32.mrb[10].mxu1  ;;  %1970 = vmatmul.mubr.bf16.vlgmr.msra.gmra.mrb[32].mxu0 %v1093_v7  ;;  %v3330_v7 = vld [vmem:[#allocation4 + $0x3c0] ss:$8 sps:$4 sm:$0xff]  }
 0x141   :  { %v3367_v18 = vpop.eup %3366  ;;  %3378 = vtanh.f32 %v571_v16  ;;  %v573_v19 = vpop.f32.mrb[11].mxu1  ;;  %2051 = vmatpush1.bf16.msra.mxu0 %v3198_v11  ;;  %3000 = vmatpush1.bf16.msra.mxu1 %v3330_v7 }
 0x142   :  { %v3369_v24 = vpop.eup %3368  ;;  %3380 = vtanh.f32 %v573_v19  ;;  %2052 = vmatprep.subr.bf16.mxu0 %v3203_v14  ;;  %v795_v11 = vpop.f32.mrb[9].mxu0  ;;  %2985 = vmatprep.subr.bf16.mxu1 %v3335_v17 }
 0x143   :  { %v3371_v27 = vpop.eup %3370  ;;  %3382 = vtanh.f32 %v773_v21  ;;  %v797_v13 = vpop.f32.mrb[10].mxu0  ;;  %v3333_v21 = vld [vmem:[#allocation4 + $0x3d0] ss:$8 sps:$4 sm:$0xff]  }
 0x144   :  { %v3373_v29 = vpop.eup %3372  ;;  %v1101_v30 = vpack.c.bf16 %v3371_v27, %v3367_v18  ;;  %3384 = vtanh.f32 %v775_v26  ;;  %v799_v16 = vpop.f32.mrb[11].mxu0 }
 0x145   :  { %2053 = vmatpush1.bf16.msra.mxu0 %v3201_v20  ;;  %v1102_v34 = vpack.c.bf16 %v3373_v29, %v3369_v24  ;;  %3386 = vtanh.f32 %v777_v28  ;;  %v3216_v20 = vld [vmem:[#allocation4 + $0x160] ss:$8 sps:$4 sm:$0xff]   ;;  %3001 = vmatpush1.bf16.msra.mxu1 %v3333_v21 }
 0x146   :  { %v577_v37 = vpop.f32.mrb[12].mxu1  ;;  %2054 = vmatprep.subr.bf16.mxu0 %v3206_v25  ;;  %3388 = vtanh.f32 %v779_v31  ;;  %v3221_v25 = vld [vmem:[#allocation4 + $0x174] ss:$8 sps:$4 sm:$0xff]   ;;  %v3338_v31 = vld [vmem:[#allocation4 + $0x3e4] ss:$8 sps:$4 sm:$0xff]   ;;  %v803_v36 = vpop.f32.mrb[12].mxu0 }
 0x147   :  { %3390 = vtanh.f32 %v577_v37  ;;  %v579_v39 = vpop.f32.mrb[13].mxu1  ;;  %1979 = vmatprep.mubr.bf16.mxu0 %v1102_v34  ;;  %v805_v42 = vpop.f32.mrb[13].mxu0  ;;  %2986 = vmatprep.subr.bf16.mxu1 %v3338_v31 }
 0x148   :  { %3392 = vtanh.f32 %v579_v39  ;;  %v581_v41 = vpop.f32.mrb[14].mxu1  ;;  %1980 = vmatmul.mubr.bf16.gmra.mrb[36].mxu0 %v1101_v30 }
 0x149   :  { %v3375_v43 = vpop.eup %3374  ;;  %3394 = vtanh.f32 %v581_v41  ;;  %v583_v44 = vpop.f32.mrb[15].mxu1  ;;  %2055 = vmatpush1.bf16.msra.mxu0 %v3204_v35  ;;  %v3219_v35 = vld [vmem:[#allocation4 + $0x170] ss:$8 sps:$4 sm:$0xff]   ;;  %v3224_v41 = vld [vmem:[#allocation4 + $0x184] ss:$8 sps:$4 sm:$0xff]  }
 0x14a   :  { %v3377_v49 = vpop.eup %3376  ;;  %3396 = vtanh.f32 %v583_v44  ;;  %2056 = vmatprep.subr.bf16.mxu0 %v3209_v38  ;;  %v3336_v38 = vld [vmem:[#allocation4 + $0x3e0] ss:$8 sps:$4 sm:$0xff]   ;;  %v807_v44 = vpop.f32.mrb[14].mxu0 }
 0x14b   :  { %v3379_v23 = vpop.eup %3378  ;;  %3398 = vtanh.f32 %v783_v47  ;;  %3002 = vmatpush1.bf16.msra.mxu1 %v3336_v38  ;;  %v809_v48 = vpop.f32.mrb[15].mxu0  ;;  %v3236_v38 = vld [vmem:[#allocation4 + $0x1c4] ss:$8 sps:$4 sm:$0xff]  }
 0x14c   :  { %v3381_v40 = vpop.eup %3380  ;;  %v1109_v51 = vpack.c.bf16 %v3379_v23, %v3375_v43  ;;  %3400 = vtanh.f32 %v785_v8  ;;  %v3222_v23 = vld [vmem:[#allocation4 + $0x180] ss:$8 sps:$4 sm:$0xff]  }
 0x14d   :  { %v3971_v54 = vpop.eup %3382  ;;  %2057 = vmatpush1.bf16.msra.mxu0 %v3207_v46  ;;  %v1110_v0 = vpack.c.bf16 %v3381_v40, %v3377_v49  ;;  %3402 = vtanh.f32 %v787_v33  ;;  %v3995_v49 = vld [vmem:[#allocation4 + $0x3f4] ss:$8 sps:$4 sm:$0xff]   ;;  %v3999_v33 = vld [vmem:[#allocation4 + $0x3f0] ss:$8 sps:$4 sm:$0xff]  }
 0x14e   :  { %v3973_v56 = vpop.eup %3384  ;;  %v587_v57 = vpop.f32.mrb[16].mxu1  ;;  %2058 = vmatprep.subr.bf16.mxu0 %v3212_v53  ;;  %3404 = vtanh.f32 %v789_v45  ;;  %v3227_v45 = vld [vmem:[#allocation4 + $0x194] ss:$8 sps:$4 sm:$0xff]   ;;  %2987 = vmatprep.subr.bf16.mxu1 %v3995_v49 }
 0x14f   :  { %v3975_v59 = vpop.eup %3386  ;;  %3406 = vtanh.f32 %v587_v57  ;;  %v589_v60 = vpop.f32.mrb[17].mxu1  ;;  %1989 = vmatprep.mubr.bf16.mxu0 %v1110_v0  ;;  %3003 = vmatpush1.bf16.msra.mxu1 %v3999_v33 }
 0x150   :  { %v3977_v61 = vpop.eup %3388  ;;  %3408 = vtanh.f32 %v589_v60  ;;  %v591_v62 = vpop.f32.mrb[18].mxu1  ;;  %1990 = vmatmul.mubr.bf16.gmra.mrb[40].mxu0 %v1109_v51  ;;  %v1097_v63 = vpack.c.bf16 %v3975_v59, %v3971_v54 }
 0x151   :  { %v3391_v2 = vpop.eup %3390  ;;  %3410 = vtanh.f32 %v591_v62  ;;  %v593_v3 = vpop.f32.mrb[19].mxu1  ;;  %2059 = vmatpush1.bf16.msra.mxu0 %v3210_v50  ;;  %v1098_v6 = vpack.c.bf16 %v3977_v61, %v3973_v56  ;;  %v3225_v62 = vld [vmem:[#allocation4 + $0x190] ss:$8 sps:$4 sm:$0xff]  }
 0x152   :  { %v3393_v9 = vpop.eup %3392  ;;  %3412 = vtanh.f32 %v593_v3  ;;  %2060 = vmatprep.subr.bf16.mxu0 %v3215_v58  ;;  %v813_v1 = vpop.f32.mrb[16].mxu0 }
 0x153   :  { %v3395_v12 = vpop.eup %3394  ;;  %3414 = vtanh.f32 %v793_v5  ;;  %v815_v5 = vpop.f32.mrb[17].mxu0 }
 0x154   :  { %v3397_v14 = vpop.eup %3396  ;;  %v1117_v15 = vpack.c.bf16 %v3395_v12, %v3391_v2  ;;  %3416 = vtanh.f32 %v795_v11 }
 0x155   :  { %v3983_v18 = vpop.eup %3398  ;;  %2061 = vmatpush1.bf16.msra.mxu0 %v3213_v4  ;;  %v1118_v19 = vpack.c.bf16 %v3397_v14, %v3393_v9  ;;  %3418 = vtanh.f32 %v797_v13  ;;  %v3230_v4 = vld [vmem:[#allocation4 + $0x1a4] ss:$8 sps:$4 sm:$0xff]   ;;  %v817_v9 = vpop.f32.mrb[18].mxu0 }
 0x156   :  { %v3985_v22 = vpop.eup %3400  ;;  %v597_v24 = vpop.f32.mrb[20].mxu1  ;;  %2062 = vmatprep.subr.bf16.mxu0 %v3218_v10  ;;  %3420 = vtanh.f32 %v799_v16 }
 0x157   :  { %v3987_v26 = vpop.eup %3402  ;;  %3422 = vtanh.f32 %v597_v24  ;;  %v599_v27 = vpop.f32.mrb[21].mxu1  ;;  %1999 = vmatprep.mubr.bf16.mxu0 %v1118_v19  ;;  %v3233_v19 = vld [vmem:[#allocation4 + $0x1b4] ss:$8 sps:$4 sm:$0xff]  }
 0x158   :  { %v3989_v28 = vpop.eup %3404  ;;  %3424 = vtanh.f32 %v599_v27  ;;  %v601_v29 = vpop.f32.mrb[22].mxu1  ;;  %2000 = vmatmul.mubr.bf16.gmra.mrb[44].mxu0 %v1117_v15  ;;  %v1105_v30 = vpack.c.bf16 %v3987_v26, %v3983_v18  ;;  %v3228_v15 = vld [vmem:[#allocation4 + $0x1a0] ss:$8 sps:$4 sm:$0xff]  }
 0x159   :  { %v3407_v32 = vpop.eup %3406  ;;  %3426 = vtanh.f32 %v601_v29  ;;  %v603_v34 = vpop.f32.mrb[23].mxu1  ;;  %2063 = vmatpush1.bf16.msra.mxu0 %v3216_v20  ;;  %v1106_v37 = vpack.c.bf16 %v3989_v28, %v3985_v22  ;;  %v3682_v28 = vld [vmem:[#allocation4 + $0x324] ss:$8 sps:$4 sm:$0xff]  }
 0x15a   :  { %v3409_v39 = vpop.eup %3408  ;;  %3428 = vtanh.f32 %v603_v34  ;;  %2064 = vmatprep.subr.bf16.mxu0 %v3221_v25  ;;  %v819_v12 = vpop.f32.mrb[19].mxu0 }
 0x15b   :  { %v3411_v43 = vpop.eup %3410  ;;  %3430 = vtanh.f32 %v803_v36  ;;  %v823_v34 = vpop.f32.mrb[20].mxu0 }
 0x15c   :  { %v3413_v46 = vpop.eup %3412  ;;  %v1125_v47 = vpack.c.bf16 %v3411_v43, %v3407_v32  ;;  %3432 = vtanh.f32 %v805_v42  ;;  %v3231_v32 = vld [vmem:[#allocation4 + $0x1b0] ss:$8 sps:$4 sm:$0xff]  }
 0x15d   :  { %v3997_v53 = vpop.eup %3414  ;;  %2065 = vmatpush1.bf16.msra.mxu0 %v3219_v35  ;;  %v1126_v8 = vpack.c.bf16 %v3413_v46, %v3409_v39  ;;  %3434 = vtanh.f32 %v807_v44  ;;  %v825_v39 = vpop.f32.mrb[21].mxu0 }
 0x15e   :  { %v4001_v40 = vpop.eup %3416  ;;  %v607_v51 = vpop.f32.mrb[24].mxu1  ;;  %2066 = vmatprep.subr.bf16.mxu0 %v3224_v41  ;;  %3436 = vtanh.f32 %v809_v48 }
 0x15f   :  { %v4004_v52 = vpop.eup %3418  ;;  %3438 = vtanh.f32 %v607_v51  ;;  %v609_v0 = vpop.f32.mrb[25].mxu1  ;;  %2009 = vmatprep.mubr.bf16.mxu0 %v1126_v8  ;;  %v3234_v8 = vld [vmem:[#allocation4 + $0x1c0] ss:$8 sps:$4 sm:$0xff]  }
 0x160   :  { %v4007_v50 = vpop.eup %3420  ;;  %3440 = vtanh.f32 %v609_v0  ;;  %v611_v55 = vpop.f32.mrb[26].mxu1  ;;  %2010 = vmatmul.mubr.bf16.gmra.mrb[48].mxu0 %v1125_v47  ;;  %v1113_v57 = vpack.c.bf16 %v4004_v52, %v3997_v53 }
 0x161   :  { %v3423_v58 = vpop.eup %3422  ;;  %3442 = vtanh.f32 %v611_v55  ;;  %v613_v60 = vpop.f32.mrb[27].mxu1  ;;  %2067 = vmatpush1.bf16.msra.mxu0 %v3222_v23  ;;  %v1114_v2 = vpack.c.bf16 %v4007_v50, %v4001_v40 }
 0x162   :  { %v3425_v3 = vpop.eup %3424  ;;  %3444 = vtanh.f32 %v613_v60  ;;  %2068 = vmatprep.subr.bf16.mxu0 %v3227_v45  ;;  %v827_v42 = vpop.f32.mrb[22].mxu0  ;;  %v3239_v45 = vld [vmem:[#allocation4 + $0x1d4] ss:$8 sps:$4 sm:$0xff]  }
 0x163   :  { %v3427_v7 = vpop.eup %3426  ;;  %3446 = vtanh.f32 %v813_v1  ;;  %v829_v46 = vpop.f32.mrb[23].mxu0 }
 0x164   :  { %v3429_v10 = vpop.eup %3428  ;;  %v1133_v11 = vpack.c.bf16 %v3427_v7, %v3423_v58  ;;  %3448 = vtanh.f32 %v815_v5  ;;  %v833_v5 = vpop.f32.mrb[24].mxu0 }
 0x165   :  { %v4013_v13 = vpop.eup %3430  ;;  %2069 = vmatpush1.bf16.msra.mxu0 %v3225_v62  ;;  %v1134_v14 = vpack.c.bf16 %v3429_v10, %v3425_v3  ;;  %3450 = vtanh.f32 %v817_v9  ;;  %v3242_v10 = vld [vmem:[#allocation4 + $0x1e4] ss:$8 sps:$4 sm:$0xff]  }
 0x166   :  { %v4015_v16 = vpop.eup %3432  ;;  %v617_v17 = vpop.f32.mrb[28].mxu1  ;;  %2070 = vmatprep.subr.bf16.mxu0 %v3230_v4  ;;  %3452 = vtanh.f32 %v819_v12  ;;  %v3237_v4 = vld [vmem:[#allocation4 + $0x1d0] ss:$8 sps:$4 sm:$0xff]  }
 0x167   :  { %v4017_v20 = vpop.eup %3434  ;;  %3454 = vtanh.f32 %v617_v17  ;;  %v619_v21 = vpop.f32.mrb[29].mxu1  ;;  %2019 = vmatprep.mubr.bf16.mxu0 %v1134_v14 }
 0x168   :  { %v4019_v24 = vpop.eup %3436  ;;  %3456 = vtanh.f32 %v619_v21  ;;  %v621_v25 = vpop.f32.mrb[30].mxu1  ;;  %2020 = vmatmul.mubr.bf16.gmra.mrb[52].mxu0 %v1133_v11  ;;  %v1121_v27 = vpack.c.bf16 %v4017_v20, %v4013_v13  ;;  %v3693_v13 = vld [vmem:[#allocation4 + $0x370] ss:$8 sps:$4 sm:$0xff]  }
 0x169   :  { %v3439_v29 = vpop.eup %3438  ;;  %3458 = vtanh.f32 %v621_v25  ;;  %v623_v31 = vpop.f32.mrb[31].mxu1  ;;  %2071 = vmatpush1.bf16.msra.mxu0 %v3228_v15  ;;  %v1122_v35 = vpack.c.bf16 %v4019_v24, %v4015_v16  ;;  %v3690_v16 = vld [vmem:[#allocation4 + $0x364] ss:$8 sps:$4 sm:$0xff]  }
 0x16a   :  { %v3441_v36 = vpop.eup %3440  ;;  %3460 = vtanh.f32 %v623_v31  ;;  %2072 = vmatprep.subr.bf16.mxu0 %v3233_v19  ;;  %v835_v11 = vpop.f32.mrb[25].mxu0 }
 0x16b   :  { %v3443_v41 = vpop.eup %3442  ;;  %3462 = vtanh.f32 %v823_v34  ;;  %v837_v14 = vpop.f32.mrb[26].mxu0  ;;  %v3245_v34 = vld [vmem:[#allocation4 + $0x1f4] ss:$8 sps:$4 sm:$0xff]  }
 0x16c   :  { %v3445_v43 = vpop.eup %3444  ;;  %v1141_v44 = vpack.c.bf16 %v3443_v41, %v3439_v29  ;;  %3464 = vtanh.f32 %v825_v39  ;;  %v839_v19 = vpop.f32.mrb[27].mxu0  ;;  %v3240_v29 = vld [vmem:[#allocation4 + $0x1e0] ss:$8 sps:$4 sm:$0xff]  }
 0x16d   :  { %v4025_v47 = vpop.eup %3446  ;;  %2073 = vmatpush1.bf16.msra.mxu0 %v3231_v32  ;;  %v1142_v48 = vpack.c.bf16 %v3445_v43, %v3441_v36  ;;  %3466 = vtanh.f32 %v827_v42 }
 0x16e   :  { %v4027_v23 = vpop.eup %3448  ;;  %v660_v51 = vpop.f32.mrb[32].mxu1  ;;  %2074 = vmatprep.subr.bf16.mxu0 %v3236_v38  ;;  %3468 = vtanh.f32 %v829_v46  ;;  %v3243_v46 = vld [vmem:[#allocation4 + $0x1f0] ss:$8 sps:$4 sm:$0xff]  }
 0x16f   :  { %v4029_v0 = vpop.eup %3450  ;;  %3470 = vtanh.f32 %v660_v51  ;;  %v662_v55 = vpop.f32.mrb[33].mxu1  ;;  %2029 = vmatprep.mubr.bf16.mxu0 %v1142_v48 }
 0x170   :  { %v4031_v58 = vpop.eup %3452  ;;  %3472 = vtanh.f32 %v662_v55  ;;  %v664_v60 = vpop.f32.mrb[34].mxu1  ;;  %2030 = vmatmul.mubr.bf16.gmra.mrb[56].mxu0 %v1141_v44  ;;  %v1129_v62 = vpack.c.bf16 %v4029_v0, %v4025_v47  ;;  %v3697_v0 = vld [vmem:[#allocation4 + $0x390] ss:$8 sps:$4 sm:$0xff]  }
 0x171   :  { %v3455_v1 = vpop.eup %3454  ;;  %3474 = vtanh.f32 %v664_v60  ;;  %v666_v3 = vpop.f32.mrb[35].mxu1  ;;  %2075 = vmatpush1.bf16.msra.mxu0 %v3234_v8  ;;  %v1130_v7 = vpack.c.bf16 %v4031_v58, %v4027_v23 }
 0x172   :  { %v3457_v9 = vpop.eup %3456  ;;  %3476 = vtanh.f32 %v666_v3  ;;  %2076 = vmatprep.subr.bf16.mxu0 %v3239_v45  ;;  %v843_v48 = vpop.f32.mrb[28].mxu0  ;;  %v3248_v45 = vld [vmem:[#allocation4 + $0x204] ss:$8 sps:$4 sm:$0xff]  }
 0x173   :  { %v3459_v12 = vpop.eup %3458  ;;  %3478 = vtanh.f32 %v833_v5  ;;  %v845_v55 = vpop.f32.mrb[29].mxu0 }
 0x174   :  { %v3461_v15 = vpop.eup %3460  ;;  %v1149_v17 = vpack.c.bf16 %v3459_v12, %v3455_v1  ;;  %3480 = vtanh.f32 %v835_v11  ;;  %v847_v1 = vpop.f32.mrb[30].mxu0  ;;  %v3246_v11 = vld [vmem:[#allocation4 + $0x200] ss:$8 sps:$4 sm:$0xff]  }
 0x175   :  { %v4037_v21 = vpop.eup %3462  ;;  %2077 = vmatpush1.bf16.msra.mxu0 %v3237_v4  ;;  %v1150_v25 = vpack.c.bf16 %v3461_v15, %v3457_v9  ;;  %3482 = vtanh.f32 %v837_v14  ;;  %v849_v5 = vpop.f32.mrb[31].mxu0  ;;  %v3251_v15 = vld [vmem:[#allocation4 + $0x214] ss:$8 sps:$4 sm:$0xff]  }
 0x176   :  { %v4039_v31 = vpop.eup %3464  ;;  %v670_v32 = vpop.f32.mrb[36].mxu1  ;;  %2078 = vmatprep.subr.bf16.mxu0 %v3242_v10  ;;  %3484 = vtanh.f32 %v839_v19 }
 0x177   :  { %v4041_v36 = vpop.eup %3466  ;;  %3486 = vtanh.f32 %v670_v32  ;;  %v672_v38 = vpop.f32.mrb[37].mxu1  ;;  %2039 = vmatprep.mubr.bf16.mxu0 %v1150_v25 }
 0x178   :  { %v4043_v39 = vpop.eup %3468  ;;  %3488 = vtanh.f32 %v672_v38  ;;  %v674_v41 = vpop.f32.mrb[38].mxu1  ;;  %2040 = vmatmul.mubr.bf16.gmra.mrb[60].mxu0 %v1149_v17  ;;  %v1137_v42 = vpack.c.bf16 %v4041_v36, %v4037_v21  ;;  %v3701_v36 = vld [vmem:[#allocation4 + $0x3b0] ss:$8 sps:$4 sm:$0xff]  }
 0x179   :  { %v3471_v43 = vpop.eup %3470  ;;  %3490 = vtanh.f32 %v674_v41  ;;  %v676_v44 = vpop.f32.mrb[39].mxu1  ;;  %2079 = vmatpush1.bf16.msra.mxu0 %v3240_v29  ;;  %v1138_v8 = vpack.c.bf16 %v4043_v39, %v4039_v31  ;;  %v3249_v41 = vld [vmem:[#allocation4 + $0x210] ss:$8 sps:$4 sm:$0xff]  }
 0x17a   :  { %v3473_v51 = vpop.eup %3472  ;;  %3492 = vtanh.f32 %v676_v44  ;;  %2080 = vmatprep.subr.bf16.mxu0 %v3245_v34 }
 0x17b   :  { %v3475_v60 = vpop.eup %3474  ;;  %3494 = vtanh.f32 %v843_v48 }
 0x17c   :  { %v3477_v3 = vpop.eup %3476  ;;  %v1095_v4 = vpack.c.bf16 %v3475_v60, %v3471_v43  ;;  %3496 = vtanh.f32 %v845_v55 }
 0x17d   :  { %v4049_v9 = vpop.eup %3478  ;;  %2081 = vmatpush1.bf16.msra.mxu0 %v3243_v46  ;;  %v1096_v10 = vpack.c.bf16 %v3477_v3, %v3473_v51  ;;  %3498 = vtanh.f32 %v847_v1  ;;  %v3254_v46 = vld [vmem:[#allocation4 + $0x224] ss:$8 sps:$4 sm:$0xff]   ;;  %v3252_v1 = vld [vmem:[#allocation4 + $0x220] ss:$8 sps:$4 sm:$0xff]  }
 0x17e   :  { %v4051_v12 = vpop.eup %3480  ;;  %v680_v14 = vpop.f32.mrb[40].mxu1  ;;  %2163 = vmatprep.subr.bf16.mxu0 %v3248_v45  ;;  %3500 = vtanh.f32 %v849_v5  ;;  %v3257_v5 = vld [vmem:[#allocation4 + $0x234] ss:$8 sps:$4 sm:$0xff]  }
 0x17f   :  { %v4053_v17 = vpop.eup %3482  ;;  %3502 = vtanh.f32 %v680_v14  ;;  %v682_v19 = vpop.f32.mrb[41].mxu1  ;;  %2082 = vmatprep.mubr.bf16.mxu0 %v1096_v10 }
 0x180   :  { %v4055_v25 = vpop.eup %3484  ;;  %3504 = vtanh.f32 %v682_v19  ;;  %v684_v29 = vpop.f32.mrb[42].mxu1  ;;  %2083 = vmatmul.mubr.bf16.vlgmr.msra.gmra.mrb[32].mxu0 %v1095_v4  ;;  %v3263_v19 = vld [vmem:[#allocation4 + $0x254] ss:$8 sps:$4 sm:$0xff]  }
 0x181   :  { %v3487_v34 = vpop.eup %3486  ;;  %3506 = vtanh.f32 %v684_v29  ;;  %v686_v38 = vpop.f32.mrb[43].mxu1  ;;  %2164 = vmatpush1.bf16.msra.mxu0 %v3246_v11  ;;  %v1146_v43 = vpack.c.bf16 %v4055_v25, %v4051_v12  ;;  %v3703_v25 = vld [vmem:[#allocation4 + $0x3c0] ss:$8 sps:$4 sm:$0xff]  }
 0x182   :  { %v3489_v44 = vpop.eup %3488  ;;  %3508 = vtanh.f32 %v686_v38  ;;  %2165 = vmatprep.subr.bf16.mxu0 %v3251_v15  ;;  %v3255_v38 = vld [vmem:[#allocation4 + $0x230] ss:$8 sps:$4 sm:$0xff]  }
 0x183   :  { %v3491_v48 = vpop.eup %3490 }
 0x184   :  { %v3493_v51 = vpop.eup %3492  ;;  %v1103_v45 = vpack.c.bf16 %v3491_v48, %v3487_v34 }
 0x185   :  { %v4061_v55 = vpop.eup %3494  ;;  %2166 = vmatpush1.bf16.msra.mxu0 %v3249_v41  ;;  %v1104_v60 = vpack.c.bf16 %v3493_v51, %v3489_v44 }
 0x186   :  { %v4063_v3 = vpop.eup %3496  ;;  %v690_v4 = vpop.f32.mrb[44].mxu1  ;;  %2167 = vmatprep.subr.bf16.mxu0 %v3254_v46  ;;  %v3260_v46 = vld [vmem:[#allocation4 + $0x244] ss:$8 sps:$4 sm:$0xff]  }
 0x187   :  { %v4065_v10 = vpop.eup %3498  ;;  %3510 = vtanh.f32 %v690_v4  ;;  %v692_v11 = vpop.f32.mrb[45].mxu1  ;;  %2092 = vmatprep.mubr.bf16.mxu0 %v1104_v60  ;;  %v3258_v4 = vld [vmem:[#allocation4 + $0x240] ss:$8 sps:$4 sm:$0xff]  }
 0x188   :  { %v4067_v14 = vpop.eup %3500  ;;  %3512 = vtanh.f32 %v692_v11  ;;  %v694_v15 = vpop.f32.mrb[46].mxu1  ;;  %2093 = vmatmul.mubr.bf16.gmra.mrb[36].mxu0 %v1103_v45 }
 0x189   :  { %v3503_v29 = vpop.eup %3502  ;;  %3514 = vtanh.f32 %v694_v15  ;;  %v696_v34 = vpop.f32.mrb[47].mxu1  ;;  %2168 = vmatpush1.bf16.msra.mxu0 %v3252_v1 }
 0x18a   :  { %v3505_v44 = vpop.eup %3504  ;;  %3516 = vtanh.f32 %v696_v34  ;;  %2169 = vmatprep.subr.bf16.mxu0 %v3257_v5  ;;  %v3261_v5 = vld [vmem:[#allocation4 + $0x250] ss:$8 sps:$4 sm:$0xff]  }
 0x18b   :  { %v3507_v48 = vpop.eup %3506 }
 0x18c   :  { %v3509_v51 = vpop.eup %3508  ;;  %v1111_v60 = vpack.c.bf16 %v3507_v48, %v3503_v29  ;;  %v3266_v29 = vld [vmem:[#allocation4 + $0x264] ss:$8 sps:$4 sm:$0xff]  }
 0x18d   :  { %2170 = vmatpush1.bf16.msra.mxu0 %v3255_v38  ;;  %v1112_v45 = vpack.c.bf16 %v3509_v51, %v3505_v44  ;;  %v3264_v51 = vld [vmem:[#allocation4 + $0x260] ss:$8 sps:$4 sm:$0xff]  }
 0x18e   :  { %v700_v11 = vpop.f32.mrb[48].mxu1  ;;  %2171 = vmatprep.subr.bf16.mxu0 %v3260_v46 }
 0x18f   :  { %3518 = vtanh.f32 %v700_v11  ;;  %v702_v15 = vpop.f32.mrb[49].mxu1  ;;  %2102 = vmatprep.mubr.bf16.mxu0 %v1112_v45  ;;  %v3269_v45 = vld [vmem:[#allocation4 + $0x274] ss:$8 sps:$4 sm:$0xff]  }
 0x190   :  { %3520 = vtanh.f32 %v702_v15  ;;  %v704_v1 = vpop.f32.mrb[50].mxu1  ;;  %2103 = vmatmul.mubr.bf16.gmra.mrb[40].mxu0 %v1111_v60 }
 0x191   :  { %v3511_v41 = vpop.eup %3510  ;;  %3522 = vtanh.f32 %v704_v1  ;;  %v706_v34 = vpop.f32.mrb[51].mxu1  ;;  %2172 = vmatpush1.bf16.msra.mxu0 %v3258_v4 }
 0x192   :  { %v3513_v32 = vpop.eup %3512  ;;  %3524 = vtanh.f32 %v706_v34  ;;  %2173 = vmatprep.subr.bf16.mxu0 %v3263_v19  ;;  %v3267_v19 = vld [vmem:[#allocation4 + $0x270] ss:$8 sps:$4 sm:$0xff]  }
 0x193   :  { %v3515_v38 = vpop.eup %3514 }
 0x194   :  { %v3517_v44 = vpop.eup %3516  ;;  %v1119_v48 = vpack.c.bf16 %v3515_v38, %v3511_v41  ;;  %v3272_v41 = vld [vmem:[#allocation4 + $0x284] ss:$8 sps:$4 sm:$0xff]  }
 0x195   :  { %2174 = vmatpush1.bf16.msra.mxu0 %v3261_v5  ;;  %v1120_v46 = vpack.c.bf16 %v3517_v44, %v3513_v32  ;;  %v3270_v44 = vld [vmem:[#allocation4 + $0x280] ss:$8 sps:$4 sm:$0xff]  }
 0x196   :  { %v710_v11 = vpop.f32.mrb[52].mxu1  ;;  %2175 = vmatprep.subr.bf16.mxu0 %v3266_v29 }
 0x197   :  { %3526 = vtanh.f32 %v710_v11  ;;  %v712_v60 = vpop.f32.mrb[53].mxu1  ;;  %2112 = vmatprep.mubr.bf16.mxu0 %v1120_v46  ;;  %v3278_v46 = vld [vmem:[#allocation4 + $0x294] ss:$8 sps:$4 sm:$0xff]  }
 0x198   :  { %3528 = vtanh.f32 %v712_v60  ;;  %v714_v15 = vpop.f32.mrb[54].mxu1  ;;  %2113 = vmatmul.mubr.bf16.gmra.mrb[44].mxu0 %v1119_v48 }
 0x199   :  { %v3519_v4 = vpop.eup %3518  ;;  %3530 = vtanh.f32 %v714_v15  ;;  %v716_v1 = vpop.f32.mrb[55].mxu1  ;;  %2176 = vmatpush1.bf16.msra.mxu0 %v3264_v51 }
 0x19a   :  { %v3521_v34 = vpop.eup %3520  ;;  %3532 = vtanh.f32 %v716_v1  ;;  %2177 = vmatprep.subr.bf16.mxu0 %v3269_v45  ;;  %v3276_v45 = vld [vmem:[#allocation4 + $0x290] ss:$8 sps:$4 sm:$0xff]  }
 0x19b   :  { %v3523_v32 = vpop.eup %3522 }
 0x19c   :  { %v3525_v5 = vpop.eup %3524  ;;  %v1127_v38 = vpack.c.bf16 %v3523_v32, %v3519_v4  ;;  %v3284_v4 = vld [vmem:[#allocation4 + $0x2a4] ss:$8 sps:$4 sm:$0xff]  }
 0x19d   :  { %2178 = vmatpush1.bf16.msra.mxu0 %v3267_v19  ;;  %v1128_v29 = vpack.c.bf16 %v3525_v5, %v3521_v34  ;;  %v3282_v5 = vld [vmem:[#allocation4 + $0x2a0] ss:$8 sps:$4 sm:$0xff]  }
 0x19e   :  { %v720_v11 = vpop.f32.mrb[56].mxu1  ;;  %2179 = vmatprep.subr.bf16.mxu0 %v3272_v41 }
 0x19f   :  { %3534 = vtanh.f32 %v720_v11  ;;  %v722_v48 = vpop.f32.mrb[57].mxu1  ;;  %2122 = vmatprep.mubr.bf16.mxu0 %v1128_v29  ;;  %v3290_v29 = vld [vmem:[#allocation4 + $0x2b4] ss:$8 sps:$4 sm:$0xff]  }
 0x1a0   :  { %3536 = vtanh.f32 %v722_v48  ;;  %v724_v60 = vpop.f32.mrb[58].mxu1  ;;  %2123 = vmatmul.mubr.bf16.gmra.mrb[48].mxu0 %v1127_v38 }
 0x1a1   :  { %v3527_v51 = vpop.eup %3526  ;;  %3538 = vtanh.f32 %v724_v60  ;;  %v726_v15 = vpop.f32.mrb[59].mxu1  ;;  %2180 = vmatpush1.bf16.msra.mxu0 %v3270_v44 }
 0x1a2   :  { %v3529_v1 = vpop.eup %3528  ;;  %3540 = vtanh.f32 %v726_v15  ;;  %2181 = vmatprep.subr.bf16.mxu0 %v3278_v46  ;;  %v3288_v46 = vld [vmem:[#allocation4 + $0x2b0] ss:$8 sps:$4 sm:$0xff]  }
 0x1a3   :  { %v3531_v19 = vpop.eup %3530 }
 0x1a4   :  { %v3533_v34 = vpop.eup %3532  ;;  %v1135_v32 = vpack.c.bf16 %v3531_v19, %v3527_v51  ;;  %v3296_v51 = vld [vmem:[#allocation4 + $0x2c4] ss:$8 sps:$4 sm:$0xff]  }
 0x1a5   :  { %2182 = vmatpush1.bf16.msra.mxu0 %v3276_v45  ;;  %v1136_v41 = vpack.c.bf16 %v3533_v34, %v3529_v1  ;;  %v3294_v34 = vld [vmem:[#allocation4 + $0x2c0] ss:$8 sps:$4 sm:$0xff]  }
 0x1a6   :  { %v730_v11 = vpop.f32.mrb[60].mxu1  ;;  %2183 = vmatprep.subr.bf16.mxu0 %v3284_v4 }
 0x1a7   :  { %3542 = vtanh.f32 %v730_v11  ;;  %v732_v38 = vpop.f32.mrb[61].mxu1  ;;  %2132 = vmatprep.mubr.bf16.mxu0 %v1136_v41  ;;  %v3302_v41 = vld [vmem:[#allocation4 + $0x2d4] ss:$8 sps:$4 sm:$0xff]  }
 0x1a8   :  { %3544 = vtanh.f32 %v732_v38  ;;  %v734_v48 = vpop.f32.mrb[62].mxu1  ;;  %2133 = vmatmul.mubr.bf16.gmra.mrb[52].mxu0 %v1135_v32 }
 0x1a9   :  { %v3535_v44 = vpop.eup %3534  ;;  %3546 = vtanh.f32 %v734_v48  ;;  %v736_v60 = vpop.f32.mrb[63].mxu1  ;;  %2184 = vmatpush1.bf16.msra.mxu0 %v3282_v5  ;;  %v3300_v48 = vld [vmem:[#allocation4 + $0x2d0] ss:$8 sps:$4 sm:$0xff]  }
 0x1aa   :  { %v3537_v15 = vpop.eup %3536  ;;  %3548 = vtanh.f32 %v736_v60  ;;  %2185 = vmatprep.subr.bf16.mxu0 %v3290_v29 }
 0x1ab   :  { %v3539_v45 = vpop.eup %3538 }
 0x1ac   :  { %v3541_v1 = vpop.eup %3540  ;;  %v1143_v19 = vpack.c.bf16 %v3539_v45, %v3535_v44  ;;  %v3308_v44 = vld [vmem:[#allocation4 + $0x2e4] ss:$8 sps:$4 sm:$0xff]  }
 0x1ad   :  { %2186 = vmatpush1.bf16.msra.mxu0 %v3288_v46  ;;  %v1144_v4 = vpack.c.bf16 %v3541_v1, %v3537_v15  ;;  %v3306_v1 = vld [vmem:[#allocation4 + $0x2e0] ss:$8 sps:$4 sm:$0xff]  }
 0x1ae   :  { %2187 = vmatprep.subr.bf16.mxu0 %v3296_v51  ;;  %v886_v11 = vpop.f32.mrb[64].mxu1 }
 0x1af   :  { %2142 = vmatprep.mubr.bf16.mxu0 %v1144_v4  ;;  %3550 = vtanh.f32 %v886_v11  ;;  %v888_v32 = vpop.f32.mrb[65].mxu1  ;;  %v3314_v4 = vld [vmem:[#allocation4 + $0x2f4] ss:$8 sps:$4 sm:$0xff]  }
 0x1b0   :  { %2143 = vmatmul.mubr.bf16.gmra.mrb[56].mxu0 %v1143_v19  ;;  %3552 = vtanh.f32 %v888_v32  ;;  %v890_v5 = vpop.f32.mrb[66].mxu1 }
 0x1b1   :  { %v3543_v38 = vpop.eup %3542  ;;  %2188 = vmatpush1.bf16.msra.mxu0 %v3294_v34  ;;  %3554 = vtanh.f32 %v890_v5  ;;  %v892_v29 = vpop.f32.mrb[67].mxu1 }
 0x1b2   :  { %v3545_v60 = vpop.eup %3544  ;;  %2189 = vmatprep.subr.bf16.mxu0 %v3302_v41  ;;  %3556 = vtanh.f32 %v892_v29  ;;  %v3312_v41 = vld [vmem:[#allocation4 + $0x2f0] ss:$8 sps:$4 sm:$0xff]  }
 0x1b3   :  { %v3547_v46 = vpop.eup %3546 }
 0x1b4   :  { %v3549_v15 = vpop.eup %3548  ;;  %v1151_v51 = vpack.c.bf16 %v3547_v46, %v3543_v38  ;;  %v3678_v46 = vld [vmem:[#allocation4 + $0x304] ss:$8 sps:$4 sm:$0xff]  }
 0x1b5   :  { %2190 = vmatpush1.bf16.msra.mxu0 %v3300_v48  ;;  %v1152_v45 = vpack.c.bf16 %v3549_v15, %v3545_v60 }
 0x1b6   :  { %2191 = vmatprep.subr.bf16.mxu0 %v3308_v44  ;;  %v896_v19 = vpop.f32.mrb[68].mxu1 }
 0x1b7   :  { %2152 = vmatprep.mubr.bf16.mxu0 %v1152_v45  ;;  %3558 = vtanh.f32 %v896_v19  ;;  %v898_v11 = vpop.f32.mrb[69].mxu1 }
 0x1b8   :  { %2153 = vmatmul.mubr.bf16.gmra.mrb[60].mxu0 %v1151_v51  ;;  %3560 = vtanh.f32 %v898_v11  ;;  %v900_v34 = vpop.f32.mrb[70].mxu1  ;;  %v3679_v51 = vld [vmem:[#allocation4 + $0x300] ss:$8 sps:$4 sm:$0xff]  }
 0x1b9   :  { %v4073_v32 = vpop.eup %3550  ;;  %2192 = vmatpush1.bf16.msra.mxu0 %v3306_v1  ;;  %2195 = vmatprep.mubr.bf16.mxu0 %v1098_v6  ;;  %3562 = vtanh.f32 %v900_v34  ;;  %v902_v5 = vpop.f32.mrb[71].mxu1 }
 0x1ba   :  { %v4078_v38 = vpop.eup %3552  ;;  %2193 = vmatprep.subr.bf16.mxu0 %v3314_v4  ;;  %3564 = vtanh.f32 %v902_v5  ;;  %v3680_v4 = vld [vmem:[#allocation4 + $0x314] ss:$8 sps:$4 sm:$0xff]   ;;  %v3683_v5 = vld [vmem:[#allocation4 + $0x320] ss:$8 sps:$4 sm:$0xff]  }
 0x1bb   :  { %v4080_v48 = vpop.eup %3554 }
 0x1bc   :  { %v4082_v29 = vpop.eup %3556  ;;  %v1099_v60 = vpack.c.bf16 %v4080_v48, %v4073_v32  ;;  %v3348_v32 = vld [vmem:[#allocation6 + $0x58] sm:$0xff]   ;;  %v3350_v48 = vld [vmem:[#allocation6 + $0x60] sm:$0xff]  }
 0x1bd   :  { %2194 = vmatpush1.bf16.msra.mxu0 %v3312_v41  ;;  %v1100_v44 = vpack.c.bf16 %v4082_v29, %v4078_v38  ;;  %v3349_v38 = vld [vmem:[#allocation6 + $0x18] sm:$0xff]   ;;  %v3351_v29 = vld [vmem:[#allocation6 + $0x20] sm:$0xff]  }
 0x1be   :  { %2276 = vmatprep.subr.bf16.mxu0 %v3678_v46  ;;  %v906_v56 = vpop.f32.mrb[72].mxu1 }
 0x1bf   :  { %3566 = vtanh.f32 %v906_v56  ;;  %v908_v61 = vpop.f32.mrb[73].mxu1 }
 0x1c0   :  { %2196 = vmatmul.mubr.bf16.vlgmr.msra.gmra.mrb[32].mxu0 %v1097_v63  ;;  %3568 = vtanh.f32 %v908_v61  ;;  %v910_v6 = vpop.f32.mrb[74].mxu1  ;;  %v3681_v63 = vld [vmem:[#allocation4 + $0x310] ss:$8 sps:$4 sm:$0xff]   ;;  %v3684_v61 = vld [vmem:[#allocation4 + $0x334] ss:$8 sps:$4 sm:$0xff]  }
 0x1c1   :  { %v4091_v15 = vpop.eup %3558  ;;  %2277 = vmatpush1.bf16.msra.mxu0 %v3679_v51  ;;  %2205 = vmatprep.mubr.bf16.mxu0 %v1106_v37  ;;  %3570 = vtanh.f32 %v910_v6  ;;  %v912_v45 = vpop.f32.mrb[75].mxu1 }
 0x1c2   :  { %v4096_v1 = vpop.eup %3560  ;;  %2278 = vmatprep.subr.bf16.mxu0 %v3680_v4  ;;  %3572 = vtanh.f32 %v912_v45 }
 0x1c3   :  { %v4098_v19 = vpop.eup %3562 }
 0x1c4   :  { %v4100_v54 = vpop.eup %3564  ;;  %v1107_v59 = vpack.c.bf16 %v4098_v19, %v4091_v15  ;;  %v3354_v15 = vld [vmem:[#allocation6 + $0x70] sm:$0xff]   ;;  %v3356_v19 = vld [vmem:[#allocation6 + $0x78] sm:$0xff]  }
 0x1c5   :  { %2279 = vmatpush1.bf16.msra.mxu0 %v3681_v63  ;;  %v1108_v22 = vpack.c.bf16 %v4100_v54, %v4096_v1  ;;  %v3687_v63 = vld [vmem:[#allocation4 + $0x340] ss:$8 sps:$4 sm:$0xff]   ;;  %v3355_v1 = vld [vmem:[#allocation6 + $0x30] sm:$0xff]   ;;  %v3357_v54 = vld [vmem:[#allocation6 + $0x38] sm:$0xff]  }
 0x1c6   :  { %2280 = vmatprep.subr.bf16.mxu0 %v3682_v28  ;;  %v916_v37 = vpop.f32.mrb[76].mxu1 }
 0x1c7   :  { %3574 = vtanh.f32 %v916_v37  ;;  %v918_v11 = vpop.f32.mrb[77].mxu1 }
 0x1c8   :  { %2206 = vmatmul.mubr.bf16.gmra.mrb[36].mxu0 %v1105_v30  ;;  %3576 = vtanh.f32 %v918_v11  ;;  %v920_v34 = vpop.f32.mrb[78].mxu1  ;;  %v3685_v30 = vld [vmem:[#allocation4 + $0x330] ss:$8 sps:$4 sm:$0xff]   ;;  %v3688_v11 = vld [vmem:[#allocation4 + $0x354] ss:$8 sps:$4 sm:$0xff]  }
 0x1c9   :  { %v4109_v41 = vpop.eup %3566  ;;  %2281 = vmatpush1.bf16.msra.mxu0 %v3683_v5  ;;  %2215 = vmatprep.mubr.bf16.mxu0 %v1114_v2  ;;  %3578 = vtanh.f32 %v920_v34  ;;  %v922_v46 = vpop.f32.mrb[79].mxu1  ;;  %v3686_v2 = vld [vmem:[#allocation4 + $0x344] ss:$8 sps:$4 sm:$0xff]  }
 0x1ca   :  { %v4114_v56 = vpop.eup %3568  ;;  %2282 = vmatprep.subr.bf16.mxu0 %v3684_v61  ;;  %3580 = vtanh.f32 %v922_v46 }
 0x1cb   :  { %v4116_v6 = vpop.eup %3570 }
 0x1cc   :  { %v4118_v18 = vpop.eup %3572  ;;  %v1115_v26 = vpack.c.bf16 %v4116_v6, %v4109_v41 }
 0x1cd   :  { %2283 = vmatpush1.bf16.msra.mxu0 %v3685_v30  ;;  %v1116_v40 = vpack.c.bf16 %v4118_v18, %v4114_v56  ;;  %v3691_v30 = vld [vmem:[#allocation4 + $0x360] ss:$8 sps:$4 sm:$0xff]  }
 0x1ce   :  { %v926_v50 = vpop.f32.mrb[80].mxu1  ;;  %2284 = vmatprep.subr.bf16.mxu0 %v3686_v2  ;;  %v1285_v56 = vld [vmem:[%s4378_s3] sm:$0x3] }
 0x1cf   :  { %3582 = vtanh.f32 %v926_v50  ;;  %v928_v51 = vpop.f32.mrb[81].mxu1 }
 0x1d0   :  { %2216 = vmatmul.mubr.bf16.gmra.mrb[40].mxu0 %v1113_v57  ;;  %3584 = vtanh.f32 %v928_v51  ;;  %v930_v45 = vpop.f32.mrb[82].mxu1  ;;  %v3689_v57 = vld [vmem:[#allocation4 + $0x350] ss:$8 sps:$4 sm:$0xff]   ;;  %v3692_v51 = vld [vmem:[#allocation4 + $0x374] ss:$8 sps:$4 sm:$0xff]  }
 0x1d1   :  { %v4127_v4 = vpop.eup %3574  ;;  %2285 = vmatpush1.bf16.msra.mxu0 %v3687_v63  ;;  %3586 = vtanh.f32 %v930_v45  ;;  %v932_v28 = vpop.f32.mrb[83].mxu1  ;;  %2225 = vmatprep.mubr.bf16.mxu0 %v1122_v35 }
 0x1d2   :  { %v4132_v37 = vpop.eup %3576  ;;  %3588 = vtanh.f32 %v932_v28  ;;  %2286 = vmatprep.subr.bf16.mxu0 %v3688_v11  ;;  %v3694_v11 = vld [vmem:[#allocation4 + $0x384] ss:$8 sps:$4 sm:$0xff]  }
 0x1d3   :  { %v4134_v34 = vpop.eup %3578 }
 0x1d4   :  { %v4136_v53 = vpop.eup %3580  ;;  %v1123_v52 = vpack.c.bf16 %v4134_v34, %v4127_v4 }
 0x1d5   :  { %2287 = vmatpush1.bf16.msra.mxu0 %v3689_v57  ;;  %v1124_v5 = vpack.c.bf16 %v4136_v53, %v4132_v37 }
 0x1d6   :  { %v936_v46 = vpop.f32.mrb[84].mxu1  ;;  %2288 = vmatprep.subr.bf16.mxu0 %v3690_v16 }
 0x1d7   :  { %3590 = vtanh.f32 %v936_v46  ;;  %v938_v24 = vpop.f32.mrb[85].mxu1 }
 0x1d8   :  { %2226 = vmatmul.mubr.bf16.gmra.mrb[44].mxu0 %v1121_v27  ;;  %3592 = vtanh.f32 %v938_v24  ;;  %v940_v35 = vpop.f32.mrb[86].mxu1  ;;  %v3696_v24 = vld [vmem:[#allocation4 + $0x394] ss:$8 sps:$4 sm:$0xff]  }
 0x1d9   :  { %v3583_v61 = vpop.eup %3582  ;;  %2289 = vmatpush1.bf16.msra.mxu0 %v3691_v30  ;;  %3594 = vtanh.f32 %v940_v35  ;;  %v942_v50 = vpop.f32.mrb[87].mxu1  ;;  %2235 = vmatprep.mubr.bf16.mxu0 %v1130_v7  ;;  %v3695_v7 = vld [vmem:[#allocation4 + $0x380] ss:$8 sps:$4 sm:$0xff]  }
 0x1da   :  { %v3585_v2 = vpop.eup %3584  ;;  %3596 = vtanh.f32 %v942_v50  ;;  %2290 = vmatprep.subr.bf16.mxu0 %v3692_v51  ;;  %v3698_v50 = vld [vmem:[#allocation4 + $0x3a4] ss:$8 sps:$4 sm:$0xff]  }
 0x1db   :  { %v3587_v45 = vpop.eup %3586 }
 0x1dc   :  { %v3589_v63 = vpop.eup %3588  ;;  %v1131_v28 = vpack.c.bf16 %v3587_v45, %v3583_v61 }
 0x1dd   :  { %2291 = vmatpush1.bf16.msra.mxu0 %v3693_v13  ;;  %v1132_v20 = vpack.c.bf16 %v3589_v63, %v3585_v2  ;;  %v3700_v63 = vld [vmem:[#allocation4 + $0x3b4] ss:$8 sps:$4 sm:$0xff]  }
 0x1de   :  { %v946_v27 = vpop.f32.mrb[88].mxu1  ;;  %2292 = vmatprep.subr.bf16.mxu0 %v3694_v11 }
 0x1df   :  { %3598 = vtanh.f32 %v946_v27  ;;  %v948_v57 = vpop.f32.mrb[89].mxu1  ;;  %2348 = vmatprep.mubr.bf16.mxu1 %v1132_v20  ;;  %v3702_v20 = vld [vmem:[#allocation4 + $0x3c4] ss:$8 sps:$4 sm:$0xff]   ;;  %v4382_v27 = vpack.c.bf16 %v4053_v17, %v4049_v9  ;;  %v4384_v9 = vpack.c.bf16 %v4065_v10, %v4061_v55  ;;  %v3707_v17 = vld [vmem:[#allocation4 + $0x3e0] ss:$8 sps:$4 sm:$0xff]   ;;  %v3346_v10 = vld [vmem:[#allocation6 + $0x50] sm:$0xff]  }
 0x1e0   :  { %2236 = vmatmul.mubr.bf16.gmra.mrb[48].mxu0 %v1129_v62  ;;  %3600 = vtanh.f32 %v948_v57  ;;  %v950_v23 = vpop.f32.mrb[90].mxu1  ;;  %2349 = vmatmul.mubr.bf16.vlgmr.msra.gmra.mrb[96].mxu1 %v1131_v28  ;;  %v3704_v57 = vld [vmem:[#allocation4 + $0x3d4] ss:$8 sps:$4 sm:$0xff]   ;;  %v3344_v55 = vld [vmem:[#allocation6 + $0x48] sm:$0xff]  }
 0x1e1   :  { %v3591_v58 = vpop.eup %3590  ;;  %2293 = vmatpush1.bf16.msra.mxu0 %v3695_v7  ;;  %3602 = vtanh.f32 %v950_v23  ;;  %v952_v46 = vpop.f32.mrb[91].mxu1  ;;  %2245 = vmatprep.mubr.bf16.mxu0 %v1138_v8  ;;  %v3699_v8 = vld [vmem:[#allocation4 + $0x3a0] ss:$8 sps:$4 sm:$0xff]  }
 0x1e2   :  { %v3593_v16 = vpop.eup %3592  ;;  %3604 = vtanh.f32 %v952_v46  ;;  %2294 = vmatprep.subr.bf16.mxu0 %v3696_v24  ;;  %v3705_v46 = vld [vmem:[#allocation4 + $0x3d0] ss:$8 sps:$4 sm:$0xff]   ;;  %v3706_v24 = vld [vmem:[#allocation4 + $0x3e4] ss:$8 sps:$4 sm:$0xff]  }
 0x1e3   :  { %v3595_v35 = vpop.eup %3594 }
 0x1e4   :  { %v3597_v61 = vpop.eup %3596  ;;  %v1139_v47 = vpack.c.bf16 %v3595_v35, %v3591_v58 }
 0x1e5   :  { %2295 = vmatpush1.bf16.msra.mxu0 %v3697_v0  ;;  %v1140_v62 = vpack.c.bf16 %v3597_v61, %v3593_v16 }
 0x1e6   :  { %v956_v30 = vpop.f32.mrb[92].mxu1  ;;  %2296 = vmatprep.subr.bf16.mxu0 %v3698_v50 }
 0x1e7   :  { %3606 = vtanh.f32 %v956_v30  ;;  %v958_v2 = vpop.f32.mrb[93].mxu1  ;;  %2358 = vmatprep.mubr.bf16.mxu1 %v1140_v62 }
 0x1e8   :  { %2246 = vmatmul.mubr.bf16.gmra.mrb[52].mxu0 %v1137_v42  ;;  %3608 = vtanh.f32 %v958_v2  ;;  %v960_v31 = vpop.f32.mrb[94].mxu1  ;;  %2359 = vmatmul.mubr.bf16.gmra.mrb[100].mxu1 %v1139_v47 }
 0x1e9   :  { %v3599_v39 = vpop.eup %3598  ;;  %2297 = vmatpush1.bf16.msra.mxu0 %v3699_v8  ;;  %3610 = vtanh.f32 %v960_v31  ;;  %v962_v51 = vpop.f32.mrb[95].mxu1  ;;  %2255 = vmatprep.mubr.bf16.mxu0 %v1146_v43  ;;  %v4383_v43 = vpack.c.bf16 %v4067_v14, %v4063_v3  ;;  %v3345_v3 = vld [vmem:[#allocation6 + $0x8] sm:$0xff]   ;;  %v3347_v14 = vld [vmem:[#allocation6 + $0x10] sm:$0xff]  }
 0x1ea   :  { %v3601_v45 = vpop.eup %3600  ;;  %3612 = vtanh.f32 %v962_v51  ;;  %2298 = vmatprep.subr.bf16.mxu0 %v3700_v63 }
 0x1eb   :  { %v3603_v28 = vpop.eup %3602 }
 0x1ec   :  { %v3605_v13 = vpop.eup %3604  ;;  %v1147_v21 = vpack.c.bf16 %v3603_v28, %v3599_v39 }
 0x1ed   :  { %2299 = vmatpush1.bf16.msra.mxu0 %v3701_v36  ;;  %v1148_v42 = vpack.c.bf16 %v3605_v13, %v3601_v45 }
 0x1ee   :  { %2300 = vmatprep.subr.bf16.mxu0 %v3702_v20 }
 0x1ef   :  { %2368 = vmatprep.mubr.bf16.mxu1 %v1148_v42 }
 0x1f0   :  { %2256 = vmatmul.mubr.bf16.gmra.mrb[56].mxu0 %v4382_v27  ;;  %2369 = vmatmul.mubr.bf16.gmra.mrb[104].mxu1 %v1147_v21 }
 0x1f1   :  { %v3607_v12 = vpop.eup %3606  ;;  %2301 = vmatpush1.bf16.msra.mxu0 %v3703_v25  ;;  %2265 = vmatprep.mubr.bf16.mxu0 %v4383_v43 }
 0x1f2   :  { %v3609_v11 = vpop.eup %3608  ;;  %2302 = vmatprep.subr.bf16.mxu0 %v3704_v57 }
 0x1f3   :  { %v3611_v23 = vpop.eup %3610 }
 0x1f4   :  { %v3613_v58 = vpop.eup %3612  ;;  %v1155_v7 = vpack.c.bf16 %v3611_v23, %v3607_v12 }
 0x1f5   :  { %2303 = vmatpush1.bf16.msra.mxu0 %v3705_v46  ;;  %v1156_v16 = vpack.c.bf16 %v3613_v58, %v3609_v11 }
 0x1f6   :  { %2304 = vmatprep.subr.bf16.mxu0 %v3706_v24 }
 0x1f7   :  { %2378 = vmatprep.mubr.bf16.mxu1 %v1156_v16 }
 0x1f8   :  { %2266 = vmatmul.mubr.bf16.gmra.mrb[60].mxu0 %v4384_v9  ;;  %2379 = vmatmul.mubr.bf16.gmra.mrb[108].mxu1 %v1155_v7 }
 0x1f9   :  { %2305 = vmatpush1.bf16.msra.mxu0 %v3707_v17  ;;  %2308 = vmatprep.mubr.bf16.mxu0 %v1100_v44  ;;  %v3353_v44 = vld [vmem:[#allocation6 + $0x28] sm:$0xff]  }
 0x1fa   :  { %2306 = vmatprep.subr.bf16.mxu0 %v3995_v49  ;;  %v3342_v49 = vld [vmem:[#allocation6 + $0x40] sm:$0xff]  }
 0x1fb   :  { %2908 = vmatprep.subr.bf16.mxu1 %v3342_v49 }
 0x1fd   :  { %2307 = vmatpush1.bf16.msra.mxu0 %v3999_v33  ;;  %v3343_v33 = vld [vmem:[#allocation6] sm:$0xff]  }
 0x1fe   :  { %2909 = vmatpush3.bf16.msra.mxu1 %v3343_v33 }
 0x1ff   :  { %2910 = vmatprep.subr.bf16.mxu1 %v3344_v55 }
 0x200   :  { %2309 = vmatmul.mubr.bf16.vlgmr.msra.gmra.mrb[32].mxu0 %v1099_v60  ;;  %v3352_v60 = vld [vmem:[#allocation6 + $0x68] sm:$0xff]  }
 0x201   :  { %2318 = vmatprep.mubr.bf16.mxu0 %v1108_v22 }
 0x202   :  { %2911 = vmatpush3.bf16.msra.mxu1 %v3345_v3 }
 0x203   :  { %2912 = vmatprep.subr.bf16.mxu1 %v3346_v10 }
 0x206   :  { %2913 = vmatpush3.bf16.msra.mxu1 %v3347_v14 }
 0x207   :  { %2914 = vmatprep.subr.bf16.mxu1 %v3348_v32 }
 0x208   :  { %2319 = vmatmul.mubr.bf16.gmra.mrb[36].mxu0 %v1107_v59  ;;  %v1287_v59 = vlaneseq }
 0x209   :  { %2328 = vmatprep.mubr.bf16.mxu0 %v1116_v40 }
 0x20a   :  { %2915 = vmatpush3.bf16.msra.mxu1 %v3349_v38  ;;  %v1288_v22 = vshrl.u32 %v1287_v59, 7 }
 0x20b   :  { %2916 = vmatprep.subr.bf16.mxu1 %v3350_v48 }
 0x20c   :  { %v1289_v41 = vsub.s32 0, %v1288_v22  ;;  %v1293_v6 = vsub.s32 1, %v1288_v22 }
 0x20e   :  { %2917 = vmatpush3.bf16.msra.mxu1 %v3351_v29  ;;  %v4198_v18 = vrot.slane %v1285_v56, %v1289_v41 }
 0x20f   :  { %2918 = vmatprep.subr.bf16.mxu1 %v3352_v60 }
 0x210   :  { %2329 = vmatmul.mubr.bf16.gmra.mrb[40].mxu0 %v1115_v26  ;;  %v4200_v26 = vrot.slane %v1285_v56, %v1293_v6 }
 0x211   :  { %2338 = vmatprep.mubr.bf16.mxu0 %v1124_v5 }
 0x212   :  { %2919 = vmatpush3.bf16.msra.mxu1 %v3353_v44 }
 0x213   :  { %2920 = vmatprep.subr.bf16.mxu1 %v3354_v15 }
 0x216   :  { %2921 = vmatpush3.bf16.msra.mxu1 %v3355_v1 }
 0x217   :  { %2922 = vmatprep.subr.bf16.mxu1 %v3356_v19 }
 0x218   :  { %2339 = vmatmul.mubr.bf16.gmra.mrb[44].mxu0 %v1123_v52 }
 0x21a   :  { %2923 = vmatpush3.bf16.msra.mxu1 %v3357_v54 }
 0x2b3   :  { %v2237_v40 = vpop.f32.mrb[48].mxu0  ;;  %v2350_v4 = vpop.f32.mrb[96].mxu1 }
 0x2b4   :  { %v3020_v37 = vadd.f32 %v2237_v40, %v4198_v18  ;;  %v2239_v34 = vpop.f32.mrb[49].mxu0  ;;  %v2352_v53 = vpop.f32.mrb[97].mxu1 }
 0x2b5   :  { %v3022_v52 = vadd.f32 %v2239_v34, %v4200_v26  ;;  %v2241_v5 = vpop.f32.mrb[50].mxu0  ;;  %v2354_v35 = vpop.f32.mrb[98].mxu1 }
 0x2b6   :  { %v3024_v61 = vadd.f32 %v2241_v5, %v4198_v18  ;;  %v3021_v47 = vadd.f32 %v3020_v37, %v2350_v4  ;;  %v2243_v0 = vpop.f32.mrb[51].mxu0  ;;  %v2356_v62 = vpop.f32.mrb[99].mxu1 }
 0x2b7   :  { %v3026_v30 = vadd.f32 %v2243_v0, %v4200_v26  ;;  %v3023_v50 = vadd.f32 %v3022_v52, %v2352_v53 }
 0x2b8   :  { %3614 = vtanh.f32 %v3021_v47  ;;  %v3025_v2 = vadd.f32 %v3024_v61, %v2354_v35 }
 0x2b9   :  { %3616 = vtanh.f32 %v3023_v50  ;;  %v3027_v31 = vadd.f32 %v3026_v30, %v2356_v62 }
 0x2ba   :  { %3618 = vtanh.f32 %v3025_v2 }
 0x2bb   :  { %3620 = vtanh.f32 %v3027_v31  ;;  %v2247_v39 = vpop.f32.mrb[52].mxu0  ;;  %v2360_v8 = vpop.f32.mrb[100].mxu1 }
 0x2bc   :  { %v3028_v51 = vadd.f32 %v2247_v39, %v4198_v18  ;;  %v2249_v45 = vpop.f32.mrb[53].mxu0  ;;  %v2362_v63 = vpop.f32.mrb[101].mxu1 }
 0x2bd   :  { %v3030_v28 = vadd.f32 %v2249_v45, %v4200_v26  ;;  %v2251_v13 = vpop.f32.mrb[54].mxu0  ;;  %v2364_v21 = vpop.f32.mrb[102].mxu1 }
 0x2be   :  { %v3032_v36 = vadd.f32 %v2251_v13, %v4198_v18  ;;  %v3029_v42 = vadd.f32 %v3028_v51, %v2360_v8  ;;  %v2253_v20 = vpop.f32.mrb[55].mxu0  ;;  %v2366_v27 = vpop.f32.mrb[103].mxu1 }
 0x2bf   :  { %v3034_v12 = vadd.f32 %v2253_v20, %v4200_v26  ;;  %v3031_v25 = vadd.f32 %v3030_v28, %v2362_v63 }
 0x2c0   :  { %3622 = vtanh.f32 %v3029_v42  ;;  %v3033_v43 = vadd.f32 %v3032_v36, %v2364_v21 }
 0x2c1   :  { %3624 = vtanh.f32 %v3031_v25  ;;  %v3035_v11 = vadd.f32 %v3034_v12, %v2366_v27 }
 0x2c2   :  { %v4210_v57 = vpop.eup %3614  ;;  %3626 = vtanh.f32 %v3033_v43 }
 0x2c3   :  { %v4212_v23 = vpop.eup %3616  ;;  %3628 = vtanh.f32 %v3035_v11  ;;  %v2257_v58 = vpop.f32.mrb[56].mxu0 }
 0x2c4   :  { %v2370_v7 = vpop.f32.mrb[104].mxu1  ;;  %v4214_v46 = vpop.eup %3618  ;;  %v3036_v16 = vadd.f32 %v2257_v58, %v4198_v18 }
 0x2c5   :  { %v2259_v24 = vpop.f32.mrb[57].mxu0  ;;  %v2372_v9 = vpop.f32.mrb[105].mxu1  ;;  %v2429_v3 = vpack.c.bf16 %v4214_v46, %v4210_v57  ;;  %v4309_v57 = vld [vmem:[%s4380_s5] ss:$0 sm:$0xff] }
 0x2c6   :  { %v4217_v17 = vpop.eup %3620  ;;  %v3038_v49 = vadd.f32 %v2259_v24, %v4200_v26  ;;  %v2261_v33 = vpop.f32.mrb[58].mxu0  ;;  %v3037_v14 = vadd.f32 %v3036_v16, %v2370_v7 }
 0x2c7   :  { %v2374_v55 = vpop.f32.mrb[106].mxu1  ;;  %v3040_v10 = vadd.f32 %v2261_v33, %v4198_v18  ;;  %v2263_v32 = vpop.f32.mrb[59].mxu0  ;;  %v2430_v48 = vpack.c.bf16 %v4217_v17, %v4212_v23 }
 0x2c8   :  { %v2376_v38 = vpop.f32.mrb[107].mxu1  ;;  %v3042_v29 = vadd.f32 %v2263_v32, %v4200_v26  ;;  %v3039_v60 = vadd.f32 %v3038_v49, %v2372_v9  ;;  %3630 = vtanh.f32 %v3037_v14 }
 0x2c9   :  { %v3041_v44 = vadd.f32 %v3040_v10, %v2374_v55 }
 0x2ca   :  { %3632 = vtanh.f32 %v3039_v60  ;;  %v3043_v15 = vadd.f32 %v3042_v29, %v2376_v38  ;;  %v4226_v1 = vpop.eup %3622 }
 0x2cb   :  { %3634 = vtanh.f32 %v3041_v44  ;;  %v4228_v19 = vpop.eup %3624  ;;  %v2267_v54 = vpop.f32.mrb[60].mxu0 }
 0x2cc   :  { %3636 = vtanh.f32 %v3043_v15  ;;  %v2380_v59 = vpop.f32.mrb[108].mxu1  ;;  %v4230_v22 = vpop.eup %3626  ;;  %v3044_v41 = vadd.f32 %v2267_v54, %v4198_v18 }
 0x2cd   :  { %v2269_v56 = vpop.f32.mrb[61].mxu0  ;;  %v2382_v6 = vpop.f32.mrb[109].mxu1  ;;  %v2431_v53 = vpack.c.bf16 %v4230_v22, %v4226_v1 }
 0x2ce   :  { %v4233_v40 = vpop.eup %3628  ;;  %v3046_v4 = vadd.f32 %v2269_v56, %v4200_v26  ;;  %v2271_v37 = vpop.f32.mrb[62].mxu0  ;;  %v3045_v5 = vadd.f32 %v3044_v41, %v2380_v59 }
 0x2cf   :  { %v2384_v34 = vpop.f32.mrb[110].mxu1  ;;  %v3048_v52 = vadd.f32 %v2271_v37, %v4198_v18  ;;  %v2273_v35 = vpop.f32.mrb[63].mxu0  ;;  %v2432_v47 = vpack.c.bf16 %v4233_v40, %v4228_v19 }
 0x2d0   :  { %v2386_v61 = vpop.f32.mrb[111].mxu1  ;;  %v3050_v0 = vadd.f32 %v2273_v35, %v4200_v26  ;;  %v3047_v62 = vadd.f32 %v3046_v4, %v2382_v6  ;;  %3638 = vtanh.f32 %v3045_v5 }
 0x2d1   :  { %v3049_v30 = vadd.f32 %v3048_v52, %v2384_v34 }
 0x2d2   :  { %3640 = vtanh.f32 %v3047_v62  ;;  %v3051_v50 = vadd.f32 %v3050_v0, %v2386_v61  ;;  %v4242_v2 = vpop.eup %3630 }
 0x2d3   :  { %3642 = vtanh.f32 %v3049_v30  ;;  %v2310_v39 = vpop.f32.mrb[32].mxu0 }
 0x2d4   :  { %v4244_v31 = vpop.eup %3632  ;;  %3644 = vtanh.f32 %v3051_v50  ;;  %v3004_v51 = vadd.f32 %v2310_v39, %v4198_v18  ;;  %v2312_v45 = vpop.f32.mrb[33].mxu0 }
 0x2d5   :  { %v4246_v8 = vpop.eup %3634  ;;  %v3005_v28 = vadd.f32 %v2312_v45, %v4200_v26  ;;  %v2314_v13 = vpop.f32.mrb[34].mxu0 }
 0x2d6   :  { %v4249_v63 = vpop.eup %3636  ;;  %v2433_v21 = vpack.c.bf16 %v4246_v8, %v4242_v2  ;;  %3646 = vtanh.f32 %v3004_v51  ;;  %v3006_v36 = vadd.f32 %v2314_v13, %v4198_v18  ;;  %v2316_v42 = vpop.f32.mrb[35].mxu0 }
 0x2d7   :  { %v2434_v20 = vpack.c.bf16 %v4249_v63, %v4244_v31  ;;  %3648 = vtanh.f32 %v3005_v28  ;;  %v3007_v27 = vadd.f32 %v2316_v42, %v4200_v26 }
 0x2d8   :  { %3650 = vtanh.f32 %v3006_v36 }
 0x2d9   :  { %3652 = vtanh.f32 %v3007_v27 }
 0x2da   :  { %v4258_v12 = vpop.eup %3638 }
 0x2db   :  { %v2320_v43 = vpop.f32.mrb[36].mxu0 }
 0x2dc   :  { %v4260_v25 = vpop.eup %3640  ;;  %v3008_v58 = vadd.f32 %v2320_v43, %v4198_v18  ;;  %v2322_v7 = vpop.f32.mrb[37].mxu0 }
 0x2dd   :  { %v4262_v11 = vpop.eup %3642  ;;  %v3009_v24 = vadd.f32 %v2322_v7, %v4200_v26  ;;  %v2324_v9 = vpop.f32.mrb[38].mxu0 }
 0x2de   :  { %v4265_v16 = vpop.eup %3644  ;;  %v2435_v49 = vpack.c.bf16 %v4262_v11, %v4258_v12  ;;  %3654 = vtanh.f32 %v3008_v58  ;;  %v3010_v33 = vadd.f32 %v2324_v9, %v4198_v18  ;;  %v2326_v55 = vpop.f32.mrb[39].mxu0 }
 0x2df   :  { %v2436_v10 = vpack.c.bf16 %v4265_v16, %v4260_v25  ;;  %3656 = vtanh.f32 %v3009_v24  ;;  %v3011_v14 = vadd.f32 %v2326_v55, %v4200_v26 }
 0x2e0   :  { %v3647_v32 = vpop.eup %3646  ;;  %3658 = vtanh.f32 %v3010_v33 }
 0x2e1   :  { %v3649_v38 = vpop.eup %3648  ;;  %3660 = vtanh.f32 %v3011_v14 }
 0x2e2   :  { %v3651_v29 = vpop.eup %3650 }
 0x2e3   :  { %v3653_v60 = vpop.eup %3652  ;;  %v2330_v44 = vpop.f32.mrb[40].mxu0  ;;  %v2421_v15 = vpack.c.bf16 %v3651_v29, %v3647_v32 }
 0x2e4   :  { %v3012_v54 = vadd.f32 %v2330_v44, %v4198_v18  ;;  %v2332_v59 = vpop.f32.mrb[41].mxu0  ;;  %v2422_v41 = vpack.c.bf16 %v3653_v60, %v3649_v38 }
 0x2e5   :  { %v3013_v56 = vadd.f32 %v2332_v59, %v4200_v26  ;;  %v2334_v6 = vpop.f32.mrb[42].mxu0 }
 0x2e6   :  { %3662 = vtanh.f32 %v3012_v54  ;;  %v3014_v4 = vadd.f32 %v2334_v6, %v4198_v18  ;;  %v2336_v37 = vpop.f32.mrb[43].mxu0  ;;  %2604 = vmatprep.mubr.bf16.mxu1 %v2422_v41 }
 0x2e7   :  { %3664 = vtanh.f32 %v3013_v56  ;;  %v3015_v34 = vadd.f32 %v2336_v37, %v4200_v26  ;;  %2605 = vmatmul.mubr.bf16.vlgmr.msra.gmra.mrb[112].mxu1 %v2421_v15 }
 0x2e8   :  { %v3655_v52 = vpop.eup %3654  ;;  %3666 = vtanh.f32 %v3014_v4 }
 0x2e9   :  { %v3657_v5 = vpop.eup %3656  ;;  %3668 = vtanh.f32 %v3015_v34 }
 0x2ea   :  { %v3659_v35 = vpop.eup %3658 }
 0x2eb   :  { %v3661_v61 = vpop.eup %3660  ;;  %v2340_v0 = vpop.f32.mrb[44].mxu0  ;;  %v2423_v62 = vpack.c.bf16 %v3659_v35, %v3655_v52 }
 0x2ec   :  { %v3016_v30 = vadd.f32 %v2340_v0, %v4198_v18  ;;  %v2342_v50 = vpop.f32.mrb[45].mxu0  ;;  %v2424_v39 = vpack.c.bf16 %v3661_v61, %v3657_v5 }
 0x2ed   :  { %v3017_v51 = vadd.f32 %v2342_v50, %v4200_v26  ;;  %v2344_v45 = vpop.f32.mrb[46].mxu0 }
 0x2ee   :  { %3670 = vtanh.f32 %v3016_v30  ;;  %v3018_v28 = vadd.f32 %v2344_v45, %v4198_v18  ;;  %v2346_v13 = vpop.f32.mrb[47].mxu0  ;;  %2612 = vmatprep.mubr.bf16.mxu1 %v2424_v39 }
 0x2ef   :  { %3672 = vtanh.f32 %v3017_v51  ;;  %v3019_v36 = vadd.f32 %v2346_v13, %v4200_v26  ;;  %2613 = vmatmul.mubr.bf16.gmra.mrb[116].mxu1 %v2423_v62 }
 0x2f0   :  { %v3663_v42 = vpop.eup %3662  ;;  %3674 = vtanh.f32 %v3018_v28 }
 0x2f1   :  { %v3665_v27 = vpop.eup %3664  ;;  %3676 = vtanh.f32 %v3019_v36 }
 0x2f2   :  { %v3667_v43 = vpop.eup %3666 }
 0x2f3   :  { %v3669_v58 = vpop.eup %3668  ;;  %v2425_v7 = vpack.c.bf16 %v3667_v43, %v3663_v42 }
 0x2f4   :  { %v2426_v24 = vpack.c.bf16 %v3669_v58, %v3665_v27 }
 0x2f6   :  { %2620 = vmatprep.mubr.bf16.mxu1 %v2426_v24 }
 0x2f7   :  { %2621 = vmatmul.mubr.bf16.gmra.mrb[120].mxu1 %v2425_v7 }
 0x2f8   :  { %v3671_v9 = vpop.eup %3670 }
 0x2f9   :  { %v3673_v33 = vpop.eup %3672 }
 0x2fa   :  { %v3675_v55 = vpop.eup %3674 }
 0x2fb   :  { %v3677_v18 = vpop.eup %3676  ;;  %v2427_v14 = vpack.c.bf16 %v3675_v55, %v3671_v9 }
 0x2fc   :  { %v2428_v32 = vpack.c.bf16 %v3677_v18, %v3673_v33 }
 0x2fe   :  { %2628 = vmatprep.mubr.bf16.mxu1 %v2428_v32 }
 0x2ff   :  { %2629 = vmatmul.mubr.bf16.gmra.mrb[124].mxu1 %v2427_v14 }
 0x300   :  { %2636 = vmatprep.mubr.bf16.mxu1 %v2430_v48 }
 0x307   :  { %2637 = vmatmul.mubr.bf16.gmra.mrb[128].mxu1 %v2429_v3 }
 0x308   :  { %2644 = vmatprep.mubr.bf16.mxu1 %v2432_v47 }
 0x30f   :  { %2645 = vmatmul.mubr.bf16.gmra.mrb[132].mxu1 %v2431_v53 }
 0x310   :  { %2652 = vmatprep.mubr.bf16.mxu1 %v2434_v20 }
 0x317   :  { %2653 = vmatmul.mubr.bf16.gmra.mrb[136].mxu1 %v2433_v21 }
 0x318   :  { %2660 = vmatprep.mubr.bf16.mxu1 %v2436_v10 }
 0x31f   :  { %2661 = vmatmul.mubr.bf16.gmra.mrb[140].mxu1 %v2435_v49 }
 0x3ba   :  { %v2924_v26 = vpop.f32.mrb[112].mxu1 }
 0x3bb   :  { %v2925_v23 = vpop.f32.mrb[113].mxu1 }
 0x3bc   :  { %v2926_v46 = vadd.f32 %v2925_v23, %v2924_v26  ;;  %v2927_v17 = vpop.f32.mrb[114].mxu1 }
 0x3bd   :  { %v2928_v3 = vpop.f32.mrb[115].mxu1 }
 0x3be   :  { %v2607_v48 = vadd.f32 %v2926_v46, %v4309_v57  ;;  %v2929_v1 = vadd.f32 %v2928_v3, %v2927_v17 }
 0x3c0   :  { %2669 = vst [vmem:[%s4381_s6] sm:$0xff] %v2607_v48  ;;  %v2610_v19 = vadd.f32 %v2929_v1, %v4309_v57 }
 0x3c2   :  { %2670 = vst [vmem:[%s4381_s6 + $0x8] sm:$0xff] %v2610_v19  ;;  %v2930_v22 = vpop.f32.mrb[116].mxu1 }
 0x3c3   :  { %v2931_v40 = vpop.f32.mrb[117].mxu1 }
 0x3c4   :  { %v2932_v53 = vadd.f32 %v2931_v40, %v2930_v22  ;;  %v2933_v47 = vpop.f32.mrb[118].mxu1 }
 0x3c5   :  { %v2934_v2 = vpop.f32.mrb[119].mxu1 }
 0x3c6   :  { %v2615_v31 = vadd.f32 %v2932_v53, %v4309_v57  ;;  %v2935_v8 = vadd.f32 %v2934_v2, %v2933_v47 }
 0x3c8   :  { %2671 = vst [vmem:[%s4381_s6 + $0x10] sm:$0xff] %v2615_v31  ;;  %v2618_v63 = vadd.f32 %v2935_v8, %v4309_v57 }
 0x3ca   :  { %2672 = vst [vmem:[%s4381_s6 + $0x18] sm:$0xff] %v2618_v63  ;;  %v2936_v21 = vpop.f32.mrb[120].mxu1 }
 0x3cb   :  { %v2937_v20 = vpop.f32.mrb[121].mxu1 }
 0x3cc   :  { %v2938_v12 = vadd.f32 %v2937_v20, %v2936_v21  ;;  %v2939_v25 = vpop.f32.mrb[122].mxu1 }
 0x3cd   :  { %v2940_v11 = vpop.f32.mrb[123].mxu1 }
 0x3ce   :  { %v2623_v16 = vadd.f32 %v2938_v12, %v4309_v57  ;;  %v2941_v49 = vadd.f32 %v2940_v11, %v2939_v25 }
 0x3d0   :  { %2673 = vst [vmem:[%s4381_s6 + $0x20] sm:$0xff] %v2623_v16  ;;  %v2626_v10 = vadd.f32 %v2941_v49, %v4309_v57 }
 0x3d2   :  { %2674 = vst [vmem:[%s4381_s6 + $0x28] sm:$0xff] %v2626_v10  ;;  %v2942_v38 = vpop.f32.mrb[124].mxu1 }
 0x3d3   :  { %v2943_v29 = vpop.f32.mrb[125].mxu1 }
 0x3d4   :  { %v2944_v60 = vadd.f32 %v2943_v29, %v2942_v38  ;;  %v2945_v44 = vpop.f32.mrb[126].mxu1 }
 0x3d5   :  { %v2946_v15 = vpop.f32.mrb[127].mxu1 }
 0x3d6   :  { %v2631_v54 = vadd.f32 %v2944_v60, %v4309_v57  ;;  %v2947_v59 = vadd.f32 %v2946_v15, %v2945_v44 }
 0x3d8   :  { %2675 = vst [vmem:[%s4381_s6 + $0x30] sm:$0xff] %v2631_v54  ;;  %v2634_v41 = vadd.f32 %v2947_v59, %v4309_v57 }
 0x3da   :  { %2676 = vst [vmem:[%s4381_s6 + $0x38] sm:$0xff] %v2634_v41  ;;  %v2948_v56 = vpop.f32.mrb[128].mxu1 }
 0x3db   :  { %v2949_v6 = vpop.f32.mrb[129].mxu1 }
 0x3dc   :  { %v2950_v4 = vadd.f32 %v2949_v6, %v2948_v56  ;;  %v2951_v37 = vpop.f32.mrb[130].mxu1 }
 0x3dd   :  { %v2952_v34 = vpop.f32.mrb[131].mxu1 }
 0x3de   :  { %v2639_v52 = vadd.f32 %v2950_v4, %v4309_v57  ;;  %v2953_v5 = vadd.f32 %v2952_v34, %v2951_v37 }
 0x3e0   :  { %2677 = vst [vmem:[%s4381_s6 + $0x40] sm:$0xff] %v2639_v52  ;;  %v2642_v35 = vadd.f32 %v2953_v5, %v4309_v57 }
 0x3e2   :  { %2678 = vst [vmem:[%s4381_s6 + $0x48] sm:$0xff] %v2642_v35  ;;  %v2954_v61 = vpop.f32.mrb[132].mxu1 }
 0x3e3   :  { %v2955_v0 = vpop.f32.mrb[133].mxu1 }
 0x3e4   :  { %v2956_v62 = vadd.f32 %v2955_v0, %v2954_v61  ;;  %v2957_v30 = vpop.f32.mrb[134].mxu1 }
 0x3e5   :  { %v2958_v50 = vpop.f32.mrb[135].mxu1 }
 0x3e6   :  { %v2647_v39 = vadd.f32 %v2956_v62, %v4309_v57  ;;  %v2959_v51 = vadd.f32 %v2958_v50, %v2957_v30 }
 0x3e8   :  { %2679 = vst [vmem:[%s4381_s6 + $0x50] sm:$0xff] %v2647_v39  ;;  %v2650_v45 = vadd.f32 %v2959_v51, %v4309_v57 }
 0x3ea   :  { %2680 = vst [vmem:[%s4381_s6 + $0x58] sm:$0xff] %v2650_v45  ;;  %v2960_v28 = vpop.f32.mrb[136].mxu1 }
 0x3eb   :  { %v2961_v13 = vpop.f32.mrb[137].mxu1 }
 0x3ec   :  { %v2962_v36 = vadd.f32 %v2961_v13, %v2960_v28  ;;  %v2963_v42 = vpop.f32.mrb[138].mxu1 }
 0x3ed   :  { %v2964_v27 = vpop.f32.mrb[139].mxu1 }
 0x3ee   :  { %v2655_v43 = vadd.f32 %v2962_v36, %v4309_v57  ;;  %v2965_v58 = vadd.f32 %v2964_v27, %v2963_v42 }
 0x3f0   :  { %2681 = vst [vmem:[%s4381_s6 + $0x60] sm:$0xff] %v2655_v43  ;;  %v2658_v7 = vadd.f32 %v2965_v58, %v4309_v57 }
 0x3f2   :  { %2682 = vst [vmem:[%s4381_s6 + $0x68] sm:$0xff] %v2658_v7  ;;  %v2966_v24 = vpop.f32.mrb[140].mxu1 }
 0x3f3   :  { %v2967_v9 = vpop.f32.mrb[141].mxu1 }
 0x3f4   :  { %v2968_v33 = vadd.f32 %v2967_v9, %v2966_v24  ;;  %v2969_v55 = vpop.f32.mrb[142].mxu1 }
 0x3f5   :  { %v2970_v18 = vpop.f32.mrb[143].mxu1 }
 0x3f6   :  { %v2663_v14 = vadd.f32 %v2968_v33, %v4309_v57  ;;  %v2971_v32 = vadd.f32 %v2970_v18, %v2969_v55 }
 0x3f8   :  { %2683 = vst [vmem:[%s4381_s6 + $0x70] sm:$0xff] %v2663_v14  ;;  %v2666_v26 = vadd.f32 %v2971_v32, %v4309_v57 }
 0x3fa   :  { %2684 = vst [vmem:[%s4381_s6 + $0x78] sm:$0xff] %v2666_v26 }
 0x3fb   :  { %2689 = vsyncpa [#allocation3], 1 }
 0x3fc   :  { %2690 = vsyncpa [#allocation5], 1 }

</bundles_post_ra>
